<compile_context>
chip_gen: v5e
topology: v5e:2x2
jax: 0.10.0
libtpu: 0.0.40
codegen_flags: <defaults>
</compile_context>

<pallas_src>
import jax
import jax.numpy as jnp
from jax import lax
from jax.experimental import pallas as pl
from jax.experimental.pallas import tpu as pltpu


# ----------------------------------------------------------------------------
# Fused Encoder kernel
# ----------------------------------------------------------------------------
def _encoder_kernel(x_ref,        # (B, Cin, H, W)      NCHW input
                    band1_ref,    # (Cin, KH, W, W*C)   conv1 banded weights (planar taps)
                    band2_ref,    # (KH, W2*C, W2*C)    conv2 banded weights (interleaved)
                    band3_ref,    # (KH, W3*C, W3*C)    conv3 banded weights
                    bias1_ref,    # (1, W*C)            pre-tiled biases
                    bias2_ref,    # (1, W2*C)
                    bias3_ref,    # (1, W3*C)
                    hsel1_ref,    # (2, B*H2, B*H)      even/odd row selectors, pool 1
                    wsel1_ref,    # (2, W*C, W2*C)      even/odd col-group selectors, pool 1
                    hsel2_ref,    # (2, B*H3, B*H2)     pool 2
                    wsel2_ref,    # (2, W2*C, W3*C)
                    gsel_ref,     # (H3*B, B*H3)        fc row-gather selectors
                    wfc_ref,      # (H3*W3*C, Nout)     fc weight, flatten perm folded in
                    bfc_ref,      # (1, Nout)
                    o_ref,        # (B, Nout)
                    xp1_ref, xp2_ref, xp3_ref):         # zero-row-padded VMEM scratch
    f32 = jnp.float32
    B, Cin, H1, W1 = x_ref.shape
    KH = band2_ref.shape[0]
    C = bias1_ref.shape[1] // W1
    H2, W2 = H1 // 2, W1 // 2
    H3, W3 = H2 // 2, W2 // 2
    Nout = o_ref.shape[1]

    def banded_conv(xp_ref, band_ref, bias_ref, hh):
        # xp_ref: (B, hh+2, K) with zero rows at top/bottom; band_ref: (KH, K, N).
        n = band_ref.shape[-1]
        k = xp_ref.shape[-1]
        acc = jnp.zeros((B * hh, n), f32)
        for ky in range(KH):
            rows = xp_ref[:, ky:ky + hh, :].reshape(B * hh, k)
            acc = acc + jnp.dot(rows, band_ref[ky], preferred_element_type=f32)
        return jnp.maximum(acc + bias_ref[...], 0.0)

    def pool(y, hsel_ref, wsel_ref):
        # 2x2 max-pool via exact 0/1 selection matmuls + element-wise max.
        r = jnp.maximum(
            jnp.dot(hsel_ref[0], y, preferred_element_type=f32),
            jnp.dot(hsel_ref[1], y, preferred_element_type=f32))
        return jnp.maximum(
            jnp.dot(r, wsel_ref[0], preferred_element_type=f32),
            jnp.dot(r, wsel_ref[1], preferred_element_type=f32))

    # ---------------- stage 1: conv1 (+ReLU) on planar NCHW input ------------
    xp1_ref[...] = jnp.zeros_like(xp1_ref)
    xp1_ref[:, :, 1:H1 + 1, :] = x_ref[...]           # in-kernel zero padding (rows)
    acc1 = jnp.zeros((B * H1, W1 * C), f32)
    for ci in range(Cin):
        for ky in range(KH):
            rows = xp1_ref[:, ci, ky:ky + H1, :].reshape(B * H1, W1)
            acc1 = acc1 + jnp.dot(rows, band1_ref[ci, ky],
                                  preferred_element_type=f32)
    y1 = jnp.maximum(acc1 + bias1_ref[...], 0.0)       # (B*H1, W1*C) lane-dense slab
    p1 = pool(y1, hsel1_ref, wsel1_ref)                # (B*H2, W2*C)

    # ---------------- stage 2: conv2 (+ReLU), pool ---------------------------
    xp2_ref[...] = jnp.zeros_like(xp2_ref)
    xp2_ref[:, 1:H2 + 1, :] = p1.reshape(B, H2, W2 * C)
    y2 = banded_conv(xp2_ref, band2_ref, bias2_ref, H2)   # (B*H2, W2*C)
    p2 = pool(y2, hsel2_ref, wsel2_ref)                   # (B*H3, W3*C)

    # ---------------- stage 3: conv3 (+ReLU) ---------------------------------
    xp3_ref[...] = jnp.zeros_like(xp3_ref)
    xp3_ref[:, 1:H3 + 1, :] = p2.reshape(B, H3, W3 * C)
    y3 = banded_conv(xp3_ref, band3_ref, bias3_ref, H3)   # (B*H3, W3*C)

    # ---------------- fc (flatten permutation folded into wfc) --------------
    k2 = W3 * C
    acc = jnp.zeros((B, Nout), f32)
    for h in range(H3):
        rows_h = jnp.dot(gsel_ref[h * B:(h + 1) * B, :], y3,
                         preferred_element_type=f32)                  # (B, W3*C)
        acc = acc + jnp.dot(rows_h, wfc_ref[h * k2:(h + 1) * k2, :],
                            preferred_element_type=f32)
    o_ref[...] = acc + bfc_ref[...]


# ----------------------------------------------------------------------------
# One-time (init) operand preparation: fold conv weights into banded matrices,
# pre-tile biases, build pooling / flatten selection matrices, permute fc weight.
# ----------------------------------------------------------------------------
def prepare_encoder_operands(params, batch_size, height, width):
    w1, w2, w3 = params["w1"], params["w2"], params["w3"]     # torch OIHW
    b1, b2, b3 = params["b1"], params["b2"], params["b3"]
    w_fc, b_fc = params["w_fc"], params["b_fc"]               # torch (out, in)

    B, H1, W1 = batch_size, height, width
    C = w1.shape[0]
    H2, W2 = H1 // 2, W1 // 2
    H3, W3 = H2 // 2, W2 // 2
    Nout = w_fc.shape[0]
    f32 = jnp.float32

    def band_planar(w):           # (Cin, KH, W1, W1*Cout), one band per (ci, ky)
        Cout, Cin, KH, KW = w.shape
        xw = jnp.arange(W1)[:, None]
        x = jnp.arange(W1)[None, :]
        kx = xw - x + KW // 2
        valid = (kx >= 0) & (kx < KW)
        kxc = jnp.clip(kx, 0, KW - 1)
        wk = jnp.transpose(w, (1, 2, 3, 0))        # (Cin, KH, KW, Cout)
        vals = wk[:, :, kxc, :]                    # (Cin, KH, W1, W1, Cout)
        vals = jnp.where(valid[None, None, :, :, None], vals, 0.0)
        return vals.reshape(Cin, KH, W1, W1 * Cout).astype(f32)

    def band_interleaved(w, W):   # (KH, W*Cin, W*Cout), one band per ky
        Cout, Cin, KH, KW = w.shape
        xw = jnp.arange(W)[:, None]
        x = jnp.arange(W)[None, :]
        kx = xw - x + KW // 2
        valid = (kx >= 0) & (kx < KW)
        kxc = jnp.clip(kx, 0, KW - 1)
        wk = jnp.transpose(w, (2, 3, 1, 0))        # (KH, KW, Cin, Cout)
        vals = wk[:, kxc, :, :]                    # (KH, W, W, Cin, Cout)
        vals = jnp.where(valid[None, :, :, None, None], vals, 0.0)
        vals = jnp.transpose(vals, (0, 1, 3, 2, 4))  # (KH, xw, ci, x, co)
        return vals.reshape(KH, W * Cin, W * Cout).astype(f32)

    def hpool_sel(h_rows):        # (2, B*h/2, B*h): even / odd row selectors
        i = jnp.arange(B * (h_rows // 2))
        b = i // (h_rows // 2)
        j = i % (h_rows // 2)
        even = jax.nn.one_hot(b * h_rows + 2 * j, B * h_rows, dtype=f32)
        odd = jax.nn.one_hot(b * h_rows + 2 * j + 1, B * h_rows, dtype=f32)
        return jnp.stack([even, odd])

    def wpool_sel(w_cols):        # (2, w*C, (w//2)*C): even / odd col-group selectors
        col = jnp.arange((w_cols // 2) * C)
        j = col // C
        c = col % C
        even = jax.nn.one_hot(2 * j * C + c, w_cols * C, dtype=f32).T
        odd = jax.nn.one_hot((2 * j + 1) * C + c, w_cols * C, dtype=f32).T
        return jnp.stack([even, odd])

    # fc weight: torch flattens NCHW -> feature c*(H3*W3) + h*W3 + w.  The kernel
    # consumes features in (h, w, c) order; fold the permutation here (free).
    t = w_fc.reshape(Nout, C, H3, W3)
    wfc_fold = jnp.transpose(t, (2, 3, 1, 0)).reshape(H3 * W3 * C, Nout).astype(f32)

    i = jnp.arange(H3 * B)        # row h*B + b selects conv3 row b*H3 + h
    gsel = jax.nn.one_hot((i % B) * H3 + i // B, B * H3, dtype=f32)

    return {
        "band1": band_planar(w1),
        "band2": band_interleaved(w2, W2),
        "band3": band_interleaved(w3, W3),
        "bias1": jnp.tile(b1, W1).reshape(1, W1 * C).astype(f32),
        "bias2": jnp.tile(b2, W2).reshape(1, W2 * C).astype(f32),
        "bias3": jnp.tile(b3, W3).reshape(1, W3 * C).astype(f32),
        "hsel1": hpool_sel(H1),
        "wsel1": wpool_sel(W1),
        "hsel2": hpool_sel(H2),
        "wsel2": wpool_sel(W2),
        "gsel": gsel,
        "wfc": wfc_fold,
        "bfc": b_fc.reshape(1, Nout).astype(f32),
    }


# ----------------------------------------------------------------------------
# Forward: one fused pallas_call, raw NCHW input, no XLA ops on the data path.
# ----------------------------------------------------------------------------
def encoder_forward(x_nchw, ops, *, variational=False, latent_size=32):
    B, Cin, H, W = x_nchw.shape
    C = ops["bias1"].shape[1] // W
    Nout = ops["bfc"].shape[1]
    H2, W2 = H // 2, W // 2
    H3, W3 = H2 // 2, W2 // 2

    vspec = pl.BlockSpec(memory_space=pltpu.MemorySpace.VMEM)
    operands = (x_nchw, ops["band1"], ops["band2"], ops["band3"],
                ops["bias1"], ops["bias2"], ops["bias3"],
                ops["hsel1"], ops["wsel1"], ops["hsel2"], ops["wsel2"],
                ops["gsel"], ops["wfc"], ops["bfc"])

    out = pl.pallas_call(
        _encoder_kernel,
        out_shape=jax.ShapeDtypeStruct((B, Nout), jnp.float32),
        in_specs=[vspec] * len(operands),
        out_specs=vspec,
        scratch_shapes=[
            pltpu.VMEM((B, Cin, H + 2, W), jnp.float32),   # padded conv1 input
            pltpu.VMEM((B, H2 + 2, W2 * C), jnp.float32),  # padded conv2 input
            pltpu.VMEM((B, H3 + 2, W3 * C), jnp.float32),  # padded conv3 input
        ],
    )(*operands)

    if variational:
        out = out.reshape(B, latent_size, 2)
    return out


# ----------------------------- deterministic params --------------------------
def init_params(key, num_channels=4, kernel_size=3, latent_size=32,
                variational=False):
    mult = 2 if variational else 1
    ks = jax.random.split(key, 8)

    def conv_w(k, cout, cin):
        return 0.1 * jax.random.normal(k, (cout, cin, kernel_size, kernel_size),
                                       jnp.float32)            # torch OIHW

    return {
        "w1": conv_w(ks[0], num_channels, 3),
        "b1": 0.1 * jax.random.normal(ks[1], (num_channels,), jnp.float32),
        "w2": conv_w(ks[2], num_channels, num_channels),
        "b2": 0.1 * jax.random.normal(ks[3], (num_channels,), jnp.float32),
        "w3": conv_w(ks[4], num_channels, num_channels),
        "b3": 0.1 * jax.random.normal(ks[5], (num_channels,), jnp.float32),
        "w_fc": 0.1 * jax.random.normal(
            ks[6], (mult * latent_size, 8 * 8 * num_channels), jnp.float32),
        "b_fc": 0.1 * jax.random.normal(ks[7], (mult * latent_size,), jnp.float32),
    }


# ------------------------------ plain-JAX reference --------------------------
def reference_forward(x_nchw, params, *, variational=False, latent_size=32):
    x = jnp.transpose(x_nchw, (0, 2, 3, 1))

    def conv(x, w_oihw, b):
        w = jnp.transpose(w_oihw, (2, 3, 1, 0))                # OIHW -> HWIO
        y = lax.conv_general_dilated(x, w, (1, 1), "SAME",
                                     dimension_numbers=("NHWC", "HWIO", "NHWC"))
        return jax.nn.relu(y + b)

    def pool(x):
        return lax.reduce_window(x, -jnp.inf, lax.max,
                                 (1, 2, 2, 1), (1, 2, 2, 1), "VALID")

    x = pool(conv(x, params["w1"], params["b1"]))
    x = pool(conv(x, params["w2"], params["b2"]))
    x = conv(x, params["w3"], params["b3"])
    B = x.shape[0]
    x = jnp.transpose(x, (0, 3, 1, 2)).reshape(B, -1)          # torch NCHW flatten
    x = x @ params["w_fc"].T + params["b_fc"]
    if variational:
        x = x.reshape(B, latent_size, 2)
    return x


if __name__ == "__main__":
    key = jax.random.PRNGKey(0)
    k_x, k_p = jax.random.split(key)

    B, C_in, HW = 2, 3, 32          # 32x32 so the fc sees 8*8*num_channels features
    num_channels, kernel_size, latent_size = 4, 3, 32

    x = jax.random.normal(k_x, (B, C_in, HW, HW), jnp.float32)   # PyTorch NCHW
    params = init_params(k_p, num_channels, kernel_size, latent_size,
                         variational=False)
    ops = prepare_encoder_operands(params, B, HW, HW)            # one-time folding

    out = encoder_forward(x, ops, variational=False, latent_size=latent_size)
    out = jax.block_until_ready(out)

    ref = reference_forward(x, params, variational=False, latent_size=latent_size)
    assert out.shape == (B, latent_size), out.shape
    assert bool(jnp.allclose(out, ref, atol=2e-3, rtol=2e-3)), "mismatch vs reference"

    print("KERNEL_OK")
</pallas_src>

<mosaic_0001>
module attributes {stable_mosaic.version = 11 : i64} {
  func.func @_encoder_kernel(%arg0: memref<2x3x32x32xf32, #tpu.memory_space<vmem>>, %arg1: memref<3x3x32x128xf32, #tpu.memory_space<vmem>>, %arg2: memref<3x64x64xf32, #tpu.memory_space<vmem>>, %arg3: memref<3x32x32xf32, #tpu.memory_space<vmem>>, %arg4: memref<1x128xf32, #tpu.memory_space<vmem>>, %arg5: memref<1x64xf32, #tpu.memory_space<vmem>>, %arg6: memref<1x32xf32, #tpu.memory_space<vmem>>, %arg7: memref<2x32x64xf32, #tpu.memory_space<vmem>>, %arg8: memref<2x128x64xf32, #tpu.memory_space<vmem>>, %arg9: memref<2x16x32xf32, #tpu.memory_space<vmem>>, %arg10: memref<2x64x32xf32, #tpu.memory_space<vmem>>, %arg11: memref<16x16xf32, #tpu.memory_space<vmem>>, %arg12: memref<256x32xf32, #tpu.memory_space<vmem>>, %arg13: memref<1x32xf32, #tpu.memory_space<vmem>>, %arg14: memref<2x32xf32, #tpu.memory_space<vmem>>, %arg15: memref<2x3x34x32xf32, #tpu.memory_space<vmem>>, %arg16: memref<2x18x64xf32, #tpu.memory_space<vmem>>, %arg17: memref<2x10x32xf32, #tpu.memory_space<vmem>>) attributes {dimension_semantics = [], scalar_prefetch = 0 : i64, scratch_operands = 3 : i64, tpu.core_type = #tpu.core_type<tc>} {
    %cst = arith.constant 0.000000e+00 : f32
    %0 = vector.broadcast %cst : f32 to vector<2x3x34x32xf32>
    %c0 = arith.constant 0 : index
    %c0_0 = arith.constant 0 : index
    %c0_1 = arith.constant 0 : index
    %c0_2 = arith.constant 0 : index
    %1 = vector.load %arg15[%c0, %c0_0, %c0_1, %c0_2] : memref<2x3x34x32xf32, #tpu.memory_space<vmem>>, vector<2x3x34x32xf32>
    tpu.vector_store %arg15[%c0, %c0_0, %c0_1, %c0_2], %0 {strides = array<i32>} : memref<2x3x34x32xf32, #tpu.memory_space<vmem>>, vector<2x3x34x32xf32>,
    %c0_3 = arith.constant 0 : index
    %c0_4 = arith.constant 0 : index
    %c0_5 = arith.constant 0 : index
    %c0_6 = arith.constant 0 : index
    %2 = vector.load %arg0[%c0_3, %c0_4, %c0_5, %c0_6] : memref<2x3x32x32xf32, #tpu.memory_space<vmem>>, vector<2x3x32x32xf32>
    %c0_7 = arith.constant 0 : index
    %c0_8 = arith.constant 0 : index
    %c1 = arith.constant 1 : index
    %c0_9 = arith.constant 0 : index
    %3 = vector.load %arg15[%c0_7, %c0_8, %c1, %c0_9] : memref<2x3x34x32xf32, #tpu.memory_space<vmem>>, vector<2x3x32x32xf32>
    tpu.vector_store %arg15[%c0_7, %c0_8, %c1, %c0_9], %2 {strides = array<i32>} : memref<2x3x34x32xf32, #tpu.memory_space<vmem>>, vector<2x3x32x32xf32>,
    %cst_10 = arith.constant 0.000000e+00 : f32
    %4 = vector.broadcast %cst_10 : f32 to vector<64x128xf32>
    %c0_11 = arith.constant 0 : index
    %c0_12 = arith.constant 0 : index
    %c0_13 = arith.constant 0 : index
    %c0_14 = arith.constant 0 : index
    %5 = vector.load %arg15[%c0_11, %c0_12, %c0_13, %c0_14] : memref<2x3x34x32xf32, #tpu.memory_space<vmem>>, vector<2x1x32x32xf32>
    %6 = vector.shape_cast %5 : vector<2x1x32x32xf32> to vector<2x32x32xf32>
    %7 = vector.shape_cast %6 : vector<2x32x32xf32> to vector<64x32xf32>
    %c0_15 = arith.constant 0 : index
    %c0_16 = arith.constant 0 : index
    %c0_17 = arith.constant 0 : index
    %c0_18 = arith.constant 0 : index
    %8 = vector.load %arg1[%c0_15, %c0_16, %c0_17, %c0_18] : memref<3x3x32x128xf32, #tpu.memory_space<vmem>>, vector<1x1x32x128xf32>
    %9 = vector.shape_cast %8 : vector<1x1x32x128xf32> to vector<32x128xf32>
    %cst_19 = arith.constant dense<0.000000e+00> : vector<64x128xf32>
    %10 = tpu.matmul %7, %9, %cst_19 {dimension_numbers = #tpu.dot_dimension_numbers<[1], [0], [0], [1], [0, 0, 1, 1], [], []>} : vector<64x32xf32>, vector<32x128xf32>, vector<64x128xf32> -> vector<64x128xf32>
    %11 = arith.addf %4, %10 : vector<64x128xf32>
    %c0_20 = arith.constant 0 : index
    %c0_21 = arith.constant 0 : index
    %c1_22 = arith.constant 1 : index
    %c0_23 = arith.constant 0 : index
    %12 = vector.load %arg15[%c0_20, %c0_21, %c1_22, %c0_23] : memref<2x3x34x32xf32, #tpu.memory_space<vmem>>, vector<2x1x32x32xf32>
    %13 = vector.shape_cast %12 : vector<2x1x32x32xf32> to vector<2x32x32xf32>
    %14 = vector.shape_cast %13 : vector<2x32x32xf32> to vector<64x32xf32>
    %c0_24 = arith.constant 0 : index
    %c1_25 = arith.constant 1 : index
    %c0_26 = arith.constant 0 : index
    %c0_27 = arith.constant 0 : index
    %15 = vector.load %arg1[%c0_24, %c1_25, %c0_26, %c0_27] : memref<3x3x32x128xf32, #tpu.memory_space<vmem>>, vector<1x1x32x128xf32>
    %16 = vector.shape_cast %15 : vector<1x1x32x128xf32> to vector<32x128xf32>
    %cst_28 = arith.constant dense<0.000000e+00> : vector<64x128xf32>
    %17 = tpu.matmul %14, %16, %cst_28 {dimension_numbers = #tpu.dot_dimension_numbers<[1], [0], [0], [1], [0, 0, 1, 1], [], []>} : vector<64x32xf32>, vector<32x128xf32>, vector<64x128xf32> -> vector<64x128xf32>
    %18 = arith.addf %11, %17 : vector<64x128xf32>
    %c0_29 = arith.constant 0 : index
    %c0_30 = arith.constant 0 : index
    %c2 = arith.constant 2 : index
    %c0_31 = arith.constant 0 : index
    %19 = vector.load %arg15[%c0_29, %c0_30, %c2, %c0_31] : memref<2x3x34x32xf32, #tpu.memory_space<vmem>>, vector<2x1x32x32xf32>
    %20 = vector.shape_cast %19 : vector<2x1x32x32xf32> to vector<2x32x32xf32>
    %21 = vector.shape_cast %20 : vector<2x32x32xf32> to vector<64x32xf32>
    %c0_32 = arith.constant 0 : index
    %c2_33 = arith.constant 2 : index
    %c0_34 = arith.constant 0 : index
    %c0_35 = arith.constant 0 : index
    %22 = vector.load %arg1[%c0_32, %c2_33, %c0_34, %c0_35] : memref<3x3x32x128xf32, #tpu.memory_space<vmem>>, vector<1x1x32x128xf32>
    %23 = vector.shape_cast %22 : vector<1x1x32x128xf32> to vector<32x128xf32>
    %cst_36 = arith.constant dense<0.000000e+00> : vector<64x128xf32>
    %24 = tpu.matmul %21, %23, %cst_36 {dimension_numbers = #tpu.dot_dimension_numbers<[1], [0], [0], [1], [0, 0, 1, 1], [], []>} : vector<64x32xf32>, vector<32x128xf32>, vector<64x128xf32> -> vector<64x128xf32>
    %25 = arith.addf %18, %24 : vector<64x128xf32>
    %c0_37 = arith.constant 0 : index
    %c1_38 = arith.constant 1 : index
    %c0_39 = arith.constant 0 : index
    %c0_40 = arith.constant 0 : index
    %26 = vector.load %arg15[%c0_37, %c1_38, %c0_39, %c0_40] : memref<2x3x34x32xf32, #tpu.memory_space<vmem>>, vector<2x1x32x32xf32>
    %27 = vector.shape_cast %26 : vector<2x1x32x32xf32> to vector<2x32x32xf32>
    %28 = vector.shape_cast %27 : vector<2x32x32xf32> to vector<64x32xf32>
    %c1_41 = arith.constant 1 : index
    %c0_42 = arith.constant 0 : index
    %c0_43 = arith.constant 0 : index
    %c0_44 = arith.constant 0 : index
    %29 = vector.load %arg1[%c1_41, %c0_42, %c0_43, %c0_44] : memref<3x3x32x128xf32, #tpu.memory_space<vmem>>, vector<1x1x32x128xf32>
    %30 = vector.shape_cast %29 : vector<1x1x32x128xf32> to vector<32x128xf32>
    %cst_45 = arith.constant dense<0.000000e+00> : vector<64x128xf32>
    %31 = tpu.matmul %28, %30, %cst_45 {dimension_numbers = #tpu.dot_dimension_numbers<[1], [0], [0], [1], [0, 0, 1, 1], [], []>} : vector<64x32xf32>, vector<32x128xf32>, vector<64x128xf32> -> vector<64x128xf32>
    %32 = arith.addf %25, %31 : vector<64x128xf32>
    %c0_46 = arith.constant 0 : index
    %c1_47 = arith.constant 1 : index
    %c1_48 = arith.constant 1 : index
    %c0_49 = arith.constant 0 : index
    %33 = vector.load %arg15[%c0_46, %c1_47, %c1_48, %c0_49] : memref<2x3x34x32xf32, #tpu.memory_space<vmem>>, vector<2x1x32x32xf32>
    %34 = vector.shape_cast %33 : vector<2x1x32x32xf32> to vector<2x32x32xf32>
    %35 = vector.shape_cast %34 : vector<2x32x32xf32> to vector<64x32xf32>
    %c1_50 = arith.constant 1 : index
    %c1_51 = arith.constant 1 : index
    %c0_52 = arith.constant 0 : index
    %c0_53 = arith.constant 0 : index
    %36 = vector.load %arg1[%c1_50, %c1_51, %c0_52, %c0_53] : memref<3x3x32x128xf32, #tpu.memory_space<vmem>>, vector<1x1x32x128xf32>
    %37 = vector.shape_cast %36 : vector<1x1x32x128xf32> to vector<32x128xf32>
    %cst_54 = arith.constant dense<0.000000e+00> : vector<64x128xf32>
    %38 = tpu.matmul %35, %37, %cst_54 {dimension_numbers = #tpu.dot_dimension_numbers<[1], [0], [0], [1], [0, 0, 1, 1], [], []>} : vector<64x32xf32>, vector<32x128xf32>, vector<64x128xf32> -> vector<64x128xf32>
    %39 = arith.addf %32, %38 : vector<64x128xf32>
    %c0_55 = arith.constant 0 : index
    %c1_56 = arith.constant 1 : index
    %c2_57 = arith.constant 2 : index
    %c0_58 = arith.constant 0 : index
    %40 = vector.load %arg15[%c0_55, %c1_56, %c2_57, %c0_58] : memref<2x3x34x32xf32, #tpu.memory_space<vmem>>, vector<2x1x32x32xf32>
    %41 = vector.shape_cast %40 : vector<2x1x32x32xf32> to vector<2x32x32xf32>
    %42 = vector.shape_cast %41 : vector<2x32x32xf32> to vector<64x32xf32>
    %c1_59 = arith.constant 1 : index
    %c2_60 = arith.constant 2 : index
    %c0_61 = arith.constant 0 : index
    %c0_62 = arith.constant 0 : index
    %43 = vector.load %arg1[%c1_59, %c2_60, %c0_61, %c0_62] : memref<3x3x32x128xf32, #tpu.memory_space<vmem>>, vector<1x1x32x128xf32>
    %44 = vector.shape_cast %43 : vector<1x1x32x128xf32> to vector<32x128xf32>
    %cst_63 = arith.constant dense<0.000000e+00> : vector<64x128xf32>
    %45 = tpu.matmul %42, %44, %cst_63 {dimension_numbers = #tpu.dot_dimension_numbers<[1], [0], [0], [1], [0, 0, 1, 1], [], []>} : vector<64x32xf32>, vector<32x128xf32>, vector<64x128xf32> -> vector<64x128xf32>
    %46 = arith.addf %39, %45 : vector<64x128xf32>
    %c0_64 = arith.constant 0 : index
    %c2_65 = arith.constant 2 : index
    %c0_66 = arith.constant 0 : index
    %c0_67 = arith.constant 0 : index
    %47 = vector.load %arg15[%c0_64, %c2_65, %c0_66, %c0_67] : memref<2x3x34x32xf32, #tpu.memory_space<vmem>>, vector<2x1x32x32xf32>
    %48 = vector.shape_cast %47 : vector<2x1x32x32xf32> to vector<2x32x32xf32>
    %49 = vector.shape_cast %48 : vector<2x32x32xf32> to vector<64x32xf32>
    %c2_68 = arith.constant 2 : index
    %c0_69 = arith.constant 0 : index
    %c0_70 = arith.constant 0 : index
    %c0_71 = arith.constant 0 : index
    %50 = vector.load %arg1[%c2_68, %c0_69, %c0_70, %c0_71] : memref<3x3x32x128xf32, #tpu.memory_space<vmem>>, vector<1x1x32x128xf32>
    %51 = vector.shape_cast %50 : vector<1x1x32x128xf32> to vector<32x128xf32>
    %cst_72 = arith.constant dense<0.000000e+00> : vector<64x128xf32>
    %52 = tpu.matmul %49, %51, %cst_72 {dimension_numbers = #tpu.dot_dimension_numbers<[1], [0], [0], [1], [0, 0, 1, 1], [], []>} : vector<64x32xf32>, vector<32x128xf32>, vector<64x128xf32> -> vector<64x128xf32>
    %53 = arith.addf %46, %52 : vector<64x128xf32>
    %c0_73 = arith.constant 0 : index
    %c2_74 = arith.constant 2 : index
    %c1_75 = arith.constant 1 : index
    %c0_76 = arith.constant 0 : index
    %54 = vector.load %arg15[%c0_73, %c2_74, %c1_75, %c0_76] : memref<2x3x34x32xf32, #tpu.memory_space<vmem>>, vector<2x1x32x32xf32>
    %55 = vector.shape_cast %54 : vector<2x1x32x32xf32> to vector<2x32x32xf32>
    %56 = vector.shape_cast %55 : vector<2x32x32xf32> to vector<64x32xf32>
    %c2_77 = arith.constant 2 : index
    %c1_78 = arith.constant 1 : index
    %c0_79 = arith.constant 0 : index
    %c0_80 = arith.constant 0 : index
    %57 = vector.load %arg1[%c2_77, %c1_78, %c0_79, %c0_80] : memref<3x3x32x128xf32, #tpu.memory_space<vmem>>, vector<1x1x32x128xf32>
    %58 = vector.shape_cast %57 : vector<1x1x32x128xf32> to vector<32x128xf32>
    %cst_81 = arith.constant dense<0.000000e+00> : vector<64x128xf32>
    %59 = tpu.matmul %56, %58, %cst_81 {dimension_numbers = #tpu.dot_dimension_numbers<[1], [0], [0], [1], [0, 0, 1, 1], [], []>} : vector<64x32xf32>, vector<32x128xf32>, vector<64x128xf32> -> vector<64x128xf32>
    %60 = arith.addf %53, %59 : vector<64x128xf32>
    %c0_82 = arith.constant 0 : index
    %c2_83 = arith.constant 2 : index
    %c2_84 = arith.constant 2 : index
    %c0_85 = arith.constant 0 : index
    %61 = vector.load %arg15[%c0_82, %c2_83, %c2_84, %c0_85] : memref<2x3x34x32xf32, #tpu.memory_space<vmem>>, vector<2x1x32x32xf32>
    %62 = vector.shape_cast %61 : vector<2x1x32x32xf32> to vector<2x32x32xf32>
    %63 = vector.shape_cast %62 : vector<2x32x32xf32> to vector<64x32xf32>
    %c2_86 = arith.constant 2 : index
    %c2_87 = arith.constant 2 : index
    %c0_88 = arith.constant 0 : index
    %c0_89 = arith.constant 0 : index
    %64 = vector.load %arg1[%c2_86, %c2_87, %c0_88, %c0_89] : memref<3x3x32x128xf32, #tpu.memory_space<vmem>>, vector<1x1x32x128xf32>
    %65 = vector.shape_cast %64 : vector<1x1x32x128xf32> to vector<32x128xf32>
    %cst_90 = arith.constant dense<0.000000e+00> : vector<64x128xf32>
    %66 = tpu.matmul %63, %65, %cst_90 {dimension_numbers = #tpu.dot_dimension_numbers<[1], [0], [0], [1], [0, 0, 1, 1], [], []>} : vector<64x32xf32>, vector<32x128xf32>, vector<64x128xf32> -> vector<64x128xf32>
    %67 = arith.addf %60, %66 : vector<64x128xf32>
    %c0_91 = arith.constant 0 : index
    %c0_92 = arith.constant 0 : index
    %68 = vector.load %arg4[%c0_91, %c0_92] : memref<1x128xf32, #tpu.memory_space<vmem>>, vector<1x128xf32>
    %69 = vector.broadcast %68 : vector<1x128xf32> to vector<64x128xf32>
    %70 = arith.addf %67, %69 : vector<64x128xf32>
    %cst_93 = arith.constant 0.000000e+00 : f32
    %71 = vector.broadcast %cst_93 : f32 to vector<64x128xf32>
    %72 = arith.maximumf %70, %71 : vector<64x128xf32>
    %c0_94 = arith.constant 0 : index
    %c0_95 = arith.constant 0 : index
    %c0_96 = arith.constant 0 : index
    %73 = vector.load %arg7[%c0_94, %c0_95, %c0_96] : memref<2x32x64xf32, #tpu.memory_space<vmem>>, vector<1x32x64xf32>
    %74 = vector.shape_cast %73 : vector<1x32x64xf32> to vector<32x64xf32>
    %cst_97 = arith.constant dense<0.000000e+00> : vector<32x128xf32>
    %75 = tpu.matmul %74, %72, %cst_97 {dimension_numbers = #tpu.dot_dimension_numbers<[1], [0], [0], [1], [0, 0, 1, 1], [], []>} : vector<32x64xf32>, vector<64x128xf32>, vector<32x128xf32> -> vector<32x128xf32>
    %c1_98 = arith.constant 1 : index
    %c0_99 = arith.constant 0 : index
    %c0_100 = arith.constant 0 : index
    %76 = vector.load %arg7[%c1_98, %c0_99, %c0_100] : memref<2x32x64xf32, #tpu.memory_space<vmem>>, vector<1x32x64xf32>
    %77 = vector.shape_cast %76 : vector<1x32x64xf32> to vector<32x64xf32>
    %cst_101 = arith.constant dense<0.000000e+00> : vector<32x128xf32>
    %78 = tpu.matmul %77, %72, %cst_101 {dimension_numbers = #tpu.dot_dimension_numbers<[1], [0], [0], [1], [0, 0, 1, 1], [], []>} : vector<32x64xf32>, vector<64x128xf32>, vector<32x128xf32> -> vector<32x128xf32>
    %79 = arith.maximumf %75, %78 : vector<32x128xf32>
    %c0_102 = arith.constant 0 : index
    %c0_103 = arith.constant 0 : index
    %c0_104 = arith.constant 0 : index
    %80 = vector.load %arg8[%c0_102, %c0_103, %c0_104] : memref<2x128x64xf32, #tpu.memory_space<vmem>>, vector<1x128x64xf32>
    %81 = vector.shape_cast %80 : vector<1x128x64xf32> to vector<128x64xf32>
    %cst_105 = arith.constant dense<0.000000e+00> : vector<32x64xf32>
    %82 = tpu.matmul %79, %81, %cst_105 {dimension_numbers = #tpu.dot_dimension_numbers<[1], [0], [0], [1], [0, 0, 1, 1], [], []>} : vector<32x128xf32>, vector<128x64xf32>, vector<32x64xf32> -> vector<32x64xf32>
    %c1_106 = arith.constant 1 : index
    %c0_107 = arith.constant 0 : index
    %c0_108 = arith.constant 0 : index
    %83 = vector.load %arg8[%c1_106, %c0_107, %c0_108] : memref<2x128x64xf32, #tpu.memory_space<vmem>>, vector<1x128x64xf32>
    %84 = vector.shape_cast %83 : vector<1x128x64xf32> to vector<128x64xf32>
    %cst_109 = arith.constant dense<0.000000e+00> : vector<32x64xf32>
    %85 = tpu.matmul %79, %84, %cst_109 {dimension_numbers = #tpu.dot_dimension_numbers<[1], [0], [0], [1], [0, 0, 1, 1], [], []>} : vector<32x128xf32>, vector<128x64xf32>, vector<32x64xf32> -> vector<32x64xf32>
    %86 = arith.maximumf %82, %85 : vector<32x64xf32>
    %cst_110 = arith.constant 0.000000e+00 : f32
    %87 = vector.broadcast %cst_110 : f32 to vector<2x18x64xf32>
    %c0_111 = arith.constant 0 : index
    %c0_112 = arith.constant 0 : index
    %c0_113 = arith.constant 0 : index
    %88 = vector.load %arg16[%c0_111, %c0_112, %c0_113] : memref<2x18x64xf32, #tpu.memory_space<vmem>>, vector<2x18x64xf32>
    tpu.vector_store %arg16[%c0_111, %c0_112, %c0_113], %87 {strides = array<i32>} : memref<2x18x64xf32, #tpu.memory_space<vmem>>, vector<2x18x64xf32>,
    %89 = vector.shape_cast %86 : vector<32x64xf32> to vector<2x16x64xf32>
    %c0_114 = arith.constant 0 : index
    %c1_115 = arith.constant 1 : index
    %c0_116 = arith.constant 0 : index
    %90 = vector.load %arg16[%c0_114, %c1_115, %c0_116] : memref<2x18x64xf32, #tpu.memory_space<vmem>>, vector<2x16x64xf32>
    tpu.vector_store %arg16[%c0_114, %c1_115, %c0_116], %89 {strides = array<i32>} : memref<2x18x64xf32, #tpu.memory_space<vmem>>, vector<2x16x64xf32>,
    %cst_117 = arith.constant 0.000000e+00 : f32
    %91 = vector.broadcast %cst_117 : f32 to vector<32x64xf32>
    %c0_118 = arith.constant 0 : index
    %c0_119 = arith.constant 0 : index
    %c0_120 = arith.constant 0 : index
    %92 = vector.load %arg16[%c0_118, %c0_119, %c0_120] : memref<2x18x64xf32, #tpu.memory_space<vmem>>, vector<2x16x64xf32>
    %93 = vector.shape_cast %92 : vector<2x16x64xf32> to vector<32x64xf32>
    %c0_121 = arith.constant 0 : index
    %c0_122 = arith.constant 0 : index
    %c0_123 = arith.constant 0 : index
    %94 = vector.load %arg2[%c0_121, %c0_122, %c0_123] : memref<3x64x64xf32, #tpu.memory_space<vmem>>, vector<1x64x64xf32>
    %95 = vector.shape_cast %94 : vector<1x64x64xf32> to vector<64x64xf32>
    %cst_124 = arith.constant dense<0.000000e+00> : vector<32x64xf32>
    %96 = tpu.matmul %93, %95, %cst_124 {dimension_numbers = #tpu.dot_dimension_numbers<[1], [0], [0], [1], [0, 0, 1, 1], [], []>} : vector<32x64xf32>, vector<64x64xf32>, vector<32x64xf32> -> vector<32x64xf32>
    %97 = arith.addf %91, %96 : vector<32x64xf32>
    %c0_125 = arith.constant 0 : index
    %c1_126 = arith.constant 1 : index
    %c0_127 = arith.constant 0 : index
    %98 = vector.load %arg16[%c0_125, %c1_126, %c0_127] : memref<2x18x64xf32, #tpu.memory_space<vmem>>, vector<2x16x64xf32>
    %99 = vector.shape_cast %98 : vector<2x16x64xf32> to vector<32x64xf32>
    %c1_128 = arith.constant 1 : index
    %c0_129 = arith.constant 0 : index
    %c0_130 = arith.constant 0 : index
    %100 = vector.load %arg2[%c1_128, %c0_129, %c0_130] : memref<3x64x64xf32, #tpu.memory_space<vmem>>, vector<1x64x64xf32>
    %101 = vector.shape_cast %100 : vector<1x64x64xf32> to vector<64x64xf32>
    %cst_131 = arith.constant dense<0.000000e+00> : vector<32x64xf32>
    %102 = tpu.matmul %99, %101, %cst_131 {dimension_numbers = #tpu.dot_dimension_numbers<[1], [0], [0], [1], [0, 0, 1, 1], [], []>} : vector<32x64xf32>, vector<64x64xf32>, vector<32x64xf32> -> vector<32x64xf32>
    %103 = arith.addf %97, %102 : vector<32x64xf32>
    %c0_132 = arith.constant 0 : index
    %c2_133 = arith.constant 2 : index
    %c0_134 = arith.constant 0 : index
    %104 = vector.load %arg16[%c0_132, %c2_133, %c0_134] : memref<2x18x64xf32, #tpu.memory_space<vmem>>, vector<2x16x64xf32>
    %105 = vector.shape_cast %104 : vector<2x16x64xf32> to vector<32x64xf32>
    %c2_135 = arith.constant 2 : index
    %c0_136 = arith.constant 0 : index
    %c0_137 = arith.constant 0 : index
    %106 = vector.load %arg2[%c2_135, %c0_136, %c0_137] : memref<3x64x64xf32, #tpu.memory_space<vmem>>, vector<1x64x64xf32>
    %107 = vector.shape_cast %106 : vector<1x64x64xf32> to vector<64x64xf32>
    %cst_138 = arith.constant dense<0.000000e+00> : vector<32x64xf32>
    %108 = tpu.matmul %105, %107, %cst_138 {dimension_numbers = #tpu.dot_dimension_numbers<[1], [0], [0], [1], [0, 0, 1, 1], [], []>} : vector<32x64xf32>, vector<64x64xf32>, vector<32x64xf32> -> vector<32x64xf32>
    %109 = arith.addf %103, %108 : vector<32x64xf32>
    %c0_139 = arith.constant 0 : index
    %c0_140 = arith.constant 0 : index
    %110 = vector.load %arg5[%c0_139, %c0_140] : memref<1x64xf32, #tpu.memory_space<vmem>>, vector<1x64xf32>
    %111 = vector.broadcast %110 : vector<1x64xf32> to vector<32x64xf32>
    %112 = arith.addf %109, %111 : vector<32x64xf32>
    %cst_141 = arith.constant 0.000000e+00 : f32
    %113 = vector.broadcast %cst_141 : f32 to vector<32x64xf32>
    %114 = arith.maximumf %112, %113 : vector<32x64xf32>
    %c0_142 = arith.constant 0 : index
    %c0_143 = arith.constant 0 : index
    %c0_144 = arith.constant 0 : index
    %115 = vector.load %arg9[%c0_142, %c0_143, %c0_144] : memref<2x16x32xf32, #tpu.memory_space<vmem>>, vector<1x16x32xf32>
    %116 = vector.shape_cast %115 : vector<1x16x32xf32> to vector<16x32xf32>
    %cst_145 = arith.constant dense<0.000000e+00> : vector<16x64xf32>
    %117 = tpu.matmul %116, %114, %cst_145 {dimension_numbers = #tpu.dot_dimension_numbers<[1], [0], [0], [1], [0, 0, 1, 1], [], []>} : vector<16x32xf32>, vector<32x64xf32>, vector<16x64xf32> -> vector<16x64xf32>
    %c1_146 = arith.constant 1 : index
    %c0_147 = arith.constant 0 : index
    %c0_148 = arith.constant 0 : index
    %118 = vector.load %arg9[%c1_146, %c0_147, %c0_148] : memref<2x16x32xf32, #tpu.memory_space<vmem>>, vector<1x16x32xf32>
    %119 = vector.shape_cast %118 : vector<1x16x32xf32> to vector<16x32xf32>
    %cst_149 = arith.constant dense<0.000000e+00> : vector<16x64xf32>
    %120 = tpu.matmul %119, %114, %cst_149 {dimension_numbers = #tpu.dot_dimension_numbers<[1], [0], [0], [1], [0, 0, 1, 1], [], []>} : vector<16x32xf32>, vector<32x64xf32>, vector<16x64xf32> -> vector<16x64xf32>
    %121 = arith.maximumf %117, %120 : vector<16x64xf32>
    %c0_150 = arith.constant 0 : index
    %c0_151 = arith.constant 0 : index
    %c0_152 = arith.constant 0 : index
    %122 = vector.load %arg10[%c0_150, %c0_151, %c0_152] : memref<2x64x32xf32, #tpu.memory_space<vmem>>, vector<1x64x32xf32>
    %123 = vector.shape_cast %122 : vector<1x64x32xf32> to vector<64x32xf32>
    %cst_153 = arith.constant dense<0.000000e+00> : vector<16x32xf32>
    %124 = tpu.matmul %121, %123, %cst_153 {dimension_numbers = #tpu.dot_dimension_numbers<[1], [0], [0], [1], [0, 0, 1, 1], [], []>} : vector<16x64xf32>, vector<64x32xf32>, vector<16x32xf32> -> vector<16x32xf32>
    %c1_154 = arith.constant 1 : index
    %c0_155 = arith.constant 0 : index
    %c0_156 = arith.constant 0 : index
    %125 = vector.load %arg10[%c1_154, %c0_155, %c0_156] : memref<2x64x32xf32, #tpu.memory_space<vmem>>, vector<1x64x32xf32>
    %126 = vector.shape_cast %125 : vector<1x64x32xf32> to vector<64x32xf32>
    %cst_157 = arith.constant dense<0.000000e+00> : vector<16x32xf32>
    %127 = tpu.matmul %121, %126, %cst_157 {dimension_numbers = #tpu.dot_dimension_numbers<[1], [0], [0], [1], [0, 0, 1, 1], [], []>} : vector<16x64xf32>, vector<64x32xf32>, vector<16x32xf32> -> vector<16x32xf32>
    %128 = arith.maximumf %124, %127 : vector<16x32xf32>
    %cst_158 = arith.constant 0.000000e+00 : f32
    %129 = vector.broadcast %cst_158 : f32 to vector<2x10x32xf32>
    %c0_159 = arith.constant 0 : index
    %c0_160 = arith.constant 0 : index
    %c0_161 = arith.constant 0 : index
    %130 = vector.load %arg17[%c0_159, %c0_160, %c0_161] : memref<2x10x32xf32, #tpu.memory_space<vmem>>, vector<2x10x32xf32>
    tpu.vector_store %arg17[%c0_159, %c0_160, %c0_161], %129 {strides = array<i32>} : memref<2x10x32xf32, #tpu.memory_space<vmem>>, vector<2x10x32xf32>,
    %131 = vector.shape_cast %128 : vector<16x32xf32> to vector<2x8x32xf32>
    %c0_162 = arith.constant 0 : index
    %c1_163 = arith.constant 1 : index
    %c0_164 = arith.constant 0 : index
    %132 = vector.load %arg17[%c0_162, %c1_163, %c0_164] : memref<2x10x32xf32, #tpu.memory_space<vmem>>, vector<2x8x32xf32>
    tpu.vector_store %arg17[%c0_162, %c1_163, %c0_164], %131 {strides = array<i32>} : memref<2x10x32xf32, #tpu.memory_space<vmem>>, vector<2x8x32xf32>,
    %cst_165 = arith.constant 0.000000e+00 : f32
    %133 = vector.broadcast %cst_165 : f32 to vector<16x32xf32>
    %c0_166 = arith.constant 0 : index
    %c0_167 = arith.constant 0 : index
    %c0_168 = arith.constant 0 : index
    %134 = vector.load %arg17[%c0_166, %c0_167, %c0_168] : memref<2x10x32xf32, #tpu.memory_space<vmem>>, vector<2x8x32xf32>
    %135 = vector.shape_cast %134 : vector<2x8x32xf32> to vector<16x32xf32>
    %c0_169 = arith.constant 0 : index
    %c0_170 = arith.constant 0 : index
    %c0_171 = arith.constant 0 : index
    %136 = vector.load %arg3[%c0_169, %c0_170, %c0_171] : memref<3x32x32xf32, #tpu.memory_space<vmem>>, vector<1x32x32xf32>
    %137 = vector.shape_cast %136 : vector<1x32x32xf32> to vector<32x32xf32>
    %cst_172 = arith.constant dense<0.000000e+00> : vector<16x32xf32>
    %138 = tpu.matmul %135, %137, %cst_172 {dimension_numbers = #tpu.dot_dimension_numbers<[1], [0], [0], [1], [0, 0, 1, 1], [], []>} : vector<16x32xf32>, vector<32x32xf32>, vector<16x32xf32> -> vector<16x32xf32>
    %139 = arith.addf %133, %138 : vector<16x32xf32>
    %c0_173 = arith.constant 0 : index
    %c1_174 = arith.constant 1 : index
    %c0_175 = arith.constant 0 : index
    %140 = vector.load %arg17[%c0_173, %c1_174, %c0_175] : memref<2x10x32xf32, #tpu.memory_space<vmem>>, vector<2x8x32xf32>
    %141 = vector.shape_cast %140 : vector<2x8x32xf32> to vector<16x32xf32>
    %c1_176 = arith.constant 1 : index
    %c0_177 = arith.constant 0 : index
    %c0_178 = arith.constant 0 : index
    %142 = vector.load %arg3[%c1_176, %c0_177, %c0_178] : memref<3x32x32xf32, #tpu.memory_space<vmem>>, vector<1x32x32xf32>
    %143 = vector.shape_cast %142 : vector<1x32x32xf32> to vector<32x32xf32>
    %cst_179 = arith.constant dense<0.000000e+00> : vector<16x32xf32>
    %144 = tpu.matmul %141, %143, %cst_179 {dimension_numbers = #tpu.dot_dimension_numbers<[1], [0], [0], [1], [0, 0, 1, 1], [], []>} : vector<16x32xf32>, vector<32x32xf32>, vector<16x32xf32> -> vector<16x32xf32>
    %145 = arith.addf %139, %144 : vector<16x32xf32>
    %c0_180 = arith.constant 0 : index
    %c2_181 = arith.constant 2 : index
    %c0_182 = arith.constant 0 : index
    %146 = vector.load %arg17[%c0_180, %c2_181, %c0_182] : memref<2x10x32xf32, #tpu.memory_space<vmem>>, vector<2x8x32xf32>
    %147 = vector.shape_cast %146 : vector<2x8x32xf32> to vector<16x32xf32>
    %c2_183 = arith.constant 2 : index
    %c0_184 = arith.constant 0 : index
    %c0_185 = arith.constant 0 : index
    %148 = vector.load %arg3[%c2_183, %c0_184, %c0_185] : memref<3x32x32xf32, #tpu.memory_space<vmem>>, vector<1x32x32xf32>
    %149 = vector.shape_cast %148 : vector<1x32x32xf32> to vector<32x32xf32>
    %cst_186 = arith.constant dense<0.000000e+00> : vector<16x32xf32>
    %150 = tpu.matmul %147, %149, %cst_186 {dimension_numbers = #tpu.dot_dimension_numbers<[1], [0], [0], [1], [0, 0, 1, 1], [], []>} : vector<16x32xf32>, vector<32x32xf32>, vector<16x32xf32> -> vector<16x32xf32>
    %151 = arith.addf %145, %150 : vector<16x32xf32>
    %c0_187 = arith.constant 0 : index
    %c0_188 = arith.constant 0 : index
    %152 = vector.load %arg6[%c0_187, %c0_188] : memref<1x32xf32, #tpu.memory_space<vmem>>, vector<1x32xf32>
    %153 = vector.broadcast %152 : vector<1x32xf32> to vector<16x32xf32>
    %154 = arith.addf %151, %153 : vector<16x32xf32>
    %cst_189 = arith.constant 0.000000e+00 : f32
    %155 = vector.broadcast %cst_189 : f32 to vector<16x32xf32>
    %156 = arith.maximumf %154, %155 : vector<16x32xf32>
    %cst_190 = arith.constant 0.000000e+00 : f32
    %157 = vector.broadcast %cst_190 : f32 to vector<2x32xf32>
    %c0_191 = arith.constant 0 : index
    %c0_192 = arith.constant 0 : index
    %158 = vector.load %arg11[%c0_191, %c0_192] : memref<16x16xf32, #tpu.memory_space<vmem>>, vector<2x16xf32>
    %cst_193 = arith.constant dense<0.000000e+00> : vector<2x32xf32>
    %159 = tpu.matmul %158, %156, %cst_193 {dimension_numbers = #tpu.dot_dimension_numbers<[1], [0], [0], [1], [0, 0, 1, 1], [], []>} : vector<2x16xf32>, vector<16x32xf32>, vector<2x32xf32> -> vector<2x32xf32>
    %c0_194 = arith.constant 0 : index
    %c0_195 = arith.constant 0 : index
    %160 = vector.load %arg12[%c0_194, %c0_195] : memref<256x32xf32, #tpu.memory_space<vmem>>, vector<32x32xf32>
    %cst_196 = arith.constant dense<0.000000e+00> : vector<2x32xf32>
    %161 = tpu.matmul %159, %160, %cst_196 {dimension_numbers = #tpu.dot_dimension_numbers<[1], [0], [0], [1], [0, 0, 1, 1], [], []>} : vector<2x32xf32>, vector<32x32xf32>, vector<2x32xf32> -> vector<2x32xf32>
    %162 = arith.addf %157, %161 : vector<2x32xf32>
    %c2_197 = arith.constant 2 : index
    %c0_198 = arith.constant 0 : index
    %163 = vector.load %arg11[%c2_197, %c0_198] : memref<16x16xf32, #tpu.memory_space<vmem>>, vector<2x16xf32>
    %cst_199 = arith.constant dense<0.000000e+00> : vector<2x32xf32>
    %164 = tpu.matmul %163, %156, %cst_199 {dimension_numbers = #tpu.dot_dimension_numbers<[1], [0], [0], [1], [0, 0, 1, 1], [], []>} : vector<2x16xf32>, vector<16x32xf32>, vector<2x32xf32> -> vector<2x32xf32>
    %c32 = arith.constant 32 : index
    %c0_200 = arith.constant 0 : index
    %165 = vector.load %arg12[%c32, %c0_200] : memref<256x32xf32, #tpu.memory_space<vmem>>, vector<32x32xf32>
    %cst_201 = arith.constant dense<0.000000e+00> : vector<2x32xf32>
    %166 = tpu.matmul %164, %165, %cst_201 {dimension_numbers = #tpu.dot_dimension_numbers<[1], [0], [0], [1], [0, 0, 1, 1], [], []>} : vector<2x32xf32>, vector<32x32xf32>, vector<2x32xf32> -> vector<2x32xf32>
    %167 = arith.addf %162, %166 : vector<2x32xf32>
    %c4 = arith.constant 4 : index
    %c0_202 = arith.constant 0 : index
    %168 = vector.load %arg11[%c4, %c0_202] : memref<16x16xf32, #tpu.memory_space<vmem>>, vector<2x16xf32>
    %cst_203 = arith.constant dense<0.000000e+00> : vector<2x32xf32>
    %169 = tpu.matmul %168, %156, %cst_203 {dimension_numbers = #tpu.dot_dimension_numbers<[1], [0], [0], [1], [0, 0, 1, 1], [], []>} : vector<2x16xf32>, vector<16x32xf32>, vector<2x32xf32> -> vector<2x32xf32>
    %c64 = arith.constant 64 : index
    %c0_204 = arith.constant 0 : index
    %170 = vector.load %arg12[%c64, %c0_204] : memref<256x32xf32, #tpu.memory_space<vmem>>, vector<32x32xf32>
    %cst_205 = arith.constant dense<0.000000e+00> : vector<2x32xf32>
    %171 = tpu.matmul %169, %170, %cst_205 {dimension_numbers = #tpu.dot_dimension_numbers<[1], [0], [0], [1], [0, 0, 1, 1], [], []>} : vector<2x32xf32>, vector<32x32xf32>, vector<2x32xf32> -> vector<2x32xf32>
    %172 = arith.addf %167, %171 : vector<2x32xf32>
    %c6 = arith.constant 6 : index
    %c0_206 = arith.constant 0 : index
    %173 = vector.load %arg11[%c6, %c0_206] : memref<16x16xf32, #tpu.memory_space<vmem>>, vector<2x16xf32>
    %cst_207 = arith.constant dense<0.000000e+00> : vector<2x32xf32>
    %174 = tpu.matmul %173, %156, %cst_207 {dimension_numbers = #tpu.dot_dimension_numbers<[1], [0], [0], [1], [0, 0, 1, 1], [], []>} : vector<2x16xf32>, vector<16x32xf32>, vector<2x32xf32> -> vector<2x32xf32>
    %c96 = arith.constant 96 : index
    %c0_208 = arith.constant 0 : index
    %175 = vector.load %arg12[%c96, %c0_208] : memref<256x32xf32, #tpu.memory_space<vmem>>, vector<32x32xf32>
    %cst_209 = arith.constant dense<0.000000e+00> : vector<2x32xf32>
    %176 = tpu.matmul %174, %175, %cst_209 {dimension_numbers = #tpu.dot_dimension_numbers<[1], [0], [0], [1], [0, 0, 1, 1], [], []>} : vector<2x32xf32>, vector<32x32xf32>, vector<2x32xf32> -> vector<2x32xf32>
    %177 = arith.addf %172, %176 : vector<2x32xf32>
    %c8 = arith.constant 8 : index
    %c0_210 = arith.constant 0 : index
    %178 = vector.load %arg11[%c8, %c0_210] : memref<16x16xf32, #tpu.memory_space<vmem>>, vector<2x16xf32>
    %cst_211 = arith.constant dense<0.000000e+00> : vector<2x32xf32>
    %179 = tpu.matmul %178, %156, %cst_211 {dimension_numbers = #tpu.dot_dimension_numbers<[1], [0], [0], [1], [0, 0, 1, 1], [], []>} : vector<2x16xf32>, vector<16x32xf32>, vector<2x32xf32> -> vector<2x32xf32>
    %c128 = arith.constant 128 : index
    %c0_212 = arith.constant 0 : index
    %180 = vector.load %arg12[%c128, %c0_212] : memref<256x32xf32, #tpu.memory_space<vmem>>, vector<32x32xf32>
    %cst_213 = arith.constant dense<0.000000e+00> : vector<2x32xf32>
    %181 = tpu.matmul %179, %180, %cst_213 {dimension_numbers = #tpu.dot_dimension_numbers<[1], [0], [0], [1], [0, 0, 1, 1], [], []>} : vector<2x32xf32>, vector<32x32xf32>, vector<2x32xf32> -> vector<2x32xf32>
    %182 = arith.addf %177, %181 : vector<2x32xf32>
    %c10 = arith.constant 10 : index
    %c0_214 = arith.constant 0 : index
    %183 = vector.load %arg11[%c10, %c0_214] : memref<16x16xf32, #tpu.memory_space<vmem>>, vector<2x16xf32>
    %cst_215 = arith.constant dense<0.000000e+00> : vector<2x32xf32>
    %184 = tpu.matmul %183, %156, %cst_215 {dimension_numbers = #tpu.dot_dimension_numbers<[1], [0], [0], [1], [0, 0, 1, 1], [], []>} : vector<2x16xf32>, vector<16x32xf32>, vector<2x32xf32> -> vector<2x32xf32>
    %c160 = arith.constant 160 : index
    %c0_216 = arith.constant 0 : index
    %185 = vector.load %arg12[%c160, %c0_216] : memref<256x32xf32, #tpu.memory_space<vmem>>, vector<32x32xf32>
    %cst_217 = arith.constant dense<0.000000e+00> : vector<2x32xf32>
    %186 = tpu.matmul %184, %185, %cst_217 {dimension_numbers = #tpu.dot_dimension_numbers<[1], [0], [0], [1], [0, 0, 1, 1], [], []>} : vector<2x32xf32>, vector<32x32xf32>, vector<2x32xf32> -> vector<2x32xf32>
    %187 = arith.addf %182, %186 : vector<2x32xf32>
    %c12 = arith.constant 12 : index
    %c0_218 = arith.constant 0 : index
    %188 = vector.load %arg11[%c12, %c0_218] : memref<16x16xf32, #tpu.memory_space<vmem>>, vector<2x16xf32>
    %cst_219 = arith.constant dense<0.000000e+00> : vector<2x32xf32>
    %189 = tpu.matmul %188, %156, %cst_219 {dimension_numbers = #tpu.dot_dimension_numbers<[1], [0], [0], [1], [0, 0, 1, 1], [], []>} : vector<2x16xf32>, vector<16x32xf32>, vector<2x32xf32> -> vector<2x32xf32>
    %c192 = arith.constant 192 : index
    %c0_220 = arith.constant 0 : index
    %190 = vector.load %arg12[%c192, %c0_220] : memref<256x32xf32, #tpu.memory_space<vmem>>, vector<32x32xf32>
    %cst_221 = arith.constant dense<0.000000e+00> : vector<2x32xf32>
    %191 = tpu.matmul %189, %190, %cst_221 {dimension_numbers = #tpu.dot_dimension_numbers<[1], [0], [0], [1], [0, 0, 1, 1], [], []>} : vector<2x32xf32>, vector<32x32xf32>, vector<2x32xf32> -> vector<2x32xf32>
    %192 = arith.addf %187, %191 : vector<2x32xf32>
    %c14 = arith.constant 14 : index
    %c0_222 = arith.constant 0 : index
    %193 = vector.load %arg11[%c14, %c0_222] : memref<16x16xf32, #tpu.memory_space<vmem>>, vector<2x16xf32>
    %cst_223 = arith.constant dense<0.000000e+00> : vector<2x32xf32>
    %194 = tpu.matmul %193, %156, %cst_223 {dimension_numbers = #tpu.dot_dimension_numbers<[1], [0], [0], [1], [0, 0, 1, 1], [], []>} : vector<2x16xf32>, vector<16x32xf32>, vector<2x32xf32> -> vector<2x32xf32>
    %c224 = arith.constant 224 : index
    %c0_224 = arith.constant 0 : index
    %195 = vector.load %arg12[%c224, %c0_224] : memref<256x32xf32, #tpu.memory_space<vmem>>, vector<32x32xf32>
    %cst_225 = arith.constant dense<0.000000e+00> : vector<2x32xf32>
    %196 = tpu.matmul %194, %195, %cst_225 {dimension_numbers = #tpu.dot_dimension_numbers<[1], [0], [0], [1], [0, 0, 1, 1], [], []>} : vector<2x32xf32>, vector<32x32xf32>, vector<2x32xf32> -> vector<2x32xf32>
    %197 = arith.addf %192, %196 : vector<2x32xf32>
    %c0_226 = arith.constant 0 : index
    %c0_227 = arith.constant 0 : index
    %198 = vector.load %arg13[%c0_226, %c0_227] : memref<1x32xf32, #tpu.memory_space<vmem>>, vector<1x32xf32>
    %199 = vector.broadcast %198 : vector<1x32xf32> to vector<2x32xf32>
    %200 = arith.addf %197, %199 : vector<2x32xf32>
    %c0_228 = arith.constant 0 : index
    %c0_229 = arith.constant 0 : index
    %201 = vector.load %arg14[%c0_228, %c0_229] : memref<2x32xf32, #tpu.memory_space<vmem>>, vector<2x32xf32>
    tpu.vector_store %arg14[%c0_228, %c0_229], %200 {strides = array<i32>} : memref<2x32xf32, #tpu.memory_space<vmem>>, vector<2x32xf32>,
    return
  }
}

</mosaic_0001>

<bundles_post_ra>
// kernel: tpu_custom_call.1
= control target key start
LH: loop header
LB: loop body
LE: loop exit
PB: predicated region body
PF: predicated region fallthrough
CT: control target
= control target key end

     0   :  { %19 = vsyncpa [#allocation6], 0  ;;  %s3280_s0 = inlined_call_operand.vmem [shape: f32[2,3,32,32], index: 0, kind: input, shape index: {}]   ;;  %s3281_s1 = inlined_call_operand.vmem [shape: f32[3,3,32,128], index: 1, kind: input, shape index: {}]   ;;  %s3282_s2 = inlined_call_operand.vmem [shape: f32[3,64,64], index: 2, kind: input, shape index: {}]   ;;  %s3283_s3 = inlined_call_operand.hbm [shape: f32[3,32,32], index: 3, kind: input, shape index: {}]   ;;  %s3284_s4 = inlined_call_operand.vmem [shape: f32[1,128], index: 4, kind: input, shape index: {}]   ;;  %s3285_s5 = inlined_call_operand.vmem [shape: f32[1,64], index: 5, kind: input, shape index: {}]   ;;  %s3286_s6 = inlined_call_operand.vmem [shape: f32[1,32], index: 6, kind: input, shape index: {}]   ;;  %s3287_s7 = inlined_call_operand.hbm [shape: f32[2,32,64], index: 7, kind: input, shape index: {}]   ;;  %s3288_s8 = inlined_call_operand.vmem [shape: f32[2,128,64], index: 8, kind: input, shape index: {}]   ;;  %s3289_s9 = inlined_call_operand.vmem [shape: f32[2,16,32], index: 9, kind: input, shape index: {}]   ;;  %s3290_s10 = inlined_call_operand.vmem [shape: f32[2,64,32], index: 10, kind: input, shape index: {}]   ;;  %s3291_s11 = inlined_call_operand.hbm [shape: f32[16,16], index: 11, kind: input, shape index: {}]   ;;  %s3292_s12 = inlined_call_operand.vmem [shape: f32[256,32], index: 12, kind: input, shape index: {}]   ;;  %s3293_s13 = inlined_call_operand.vmem [shape: f32[1,32], index: 13, kind: input, shape index: {}]   ;;  %s3294_s14 = inlined_call_operand.hbm [shape: f32[2,32], index: 14, kind: output, shape index: {}]  }
   0x1   :  { %20 = vsyncpa [#allocation9], 0 }
   0x2   :  { %21 = vsyncpa [#allocation7], 0  ;;  %s51_s15 = sshll.u32 %s3287_s7, 4  ;;  %s2340_s16 = smov [#allocation8]   ;;  %s52_s15 = int_to_ptr.hbm [resolvable:$true] %s51_s15 }
   0x3   :  { %s53_s17 = sshll.u32 %s2340_s16, 4  ;;  %s32_s20 = sshll.u32 %s3283_s3, 4  ;;  %s54_s17 = int_to_ptr.vmem [resolvable:$true] %s53_s17  ;;  %s33_s20 = int_to_ptr.hbm [resolvable:$true] %s32_s20 }
   0x4   :  { %s2341_s21 = smov 128   ;;  %s2342_s22 = smov 8  }
   0x5   :  { %59 = dma.hbm_to_vmem [thread:$0]  %s52_s15, 1024, %s54_s17, [#allocation9], %s2341_s21, %s2341_s21, %s2342_s22  }
   0x6   :  { %s2343_s23 = smov [#allocation5]   ;;  %s70_s27 = sshll.u32 %s3291_s11, 4  ;;  %s71_s27 = int_to_ptr.hbm [resolvable:$true] %s70_s27 }
   0x7   :  { %s34_s24 = sshll.u32 %s2343_s23, 4  ;;  %s2344_s7 = smov [#allocation10]   ;;  %s35_s24 = int_to_ptr.vmem [resolvable:$true] %s34_s24 }
   0x8   :  { %40 = dma.hbm_to_vmem [thread:$0]  %s33_s20, 1536, %s35_s24, [#allocation6], %s2341_s21, %s2341_s21, %s2342_s22  }
   0x9   :  { %s72_s28 = sshll.u32 %s2344_s7, 4  ;;  %s73_s28 = int_to_ptr.vmem [resolvable:$true] %s72_s28 }
   0xa   :  { %78 = dma.hbm_to_vmem [thread:$0]  %s71_s27, 256, %s73_s28, [#allocation9], %s2341_s21, %s2341_s21, %s2342_s22  }
   0xb   :  { %2334 = dma.done.wait [#allocation6], 1536  }
   0xc   :  { %2335 = vsyncadd [#allocation6], 4294965760 }
   0xd   :  { %2336 = dma.done.wait [#allocation9], 1280  }
   0xe   :  { %2337 = vsyncadd [#allocation9], 4294966016  ;;  %vm95_vm0 = vcmask 261120   ;;  %v3295_v0 = vmov 0.0   ;;  %v2034_v1 = vld [vmem:[%s3281_s1 + $0x38] sm:$0xff]  ;;  %v2033_v4 = vld [vmem:[%s3281_s1 + $0x30] sm:$0xff] }
   0xf   :  { %96 = vst.msk [vmem:[#allocation2] sm:$0xff] %vm95_vm0, %v3295_v0  ;;  %v186_v2 = vld [vmem:[%s3281_s1 + $0x18] sm:$0xff]  ;;  %236 = vmatpush.msra.mxu0 %v2034_v1  ;;  %v185_v5 = vld [vmem:[%s3281_s1 + $0x10] sm:$0xff]  ;;  %v2032_v8 = vld [vmem:[%s3281_s1 + $0x28] sm:$0xff]  ;;  %vm100_vm1 = vcmask 254976   ;;  %vm958_vm2 = vcmask 523264  }
  0x10   :  { %97 = vst.msk [vmem:[#allocation2 + $0x8] sm:$0xff] %vm95_vm0, %v3295_v0  ;;  %v2054_v3 = vld [vmem:[%s3281_s1 + $0x58] sm:$0xff]  ;;  %301 = vmatpush.msra.mxu1 %v186_v2  ;;  %v2053_v6 = vld [vmem:[%s3281_s1 + $0x50] sm:$0xff]  ;;  %v184_v9 = vld [vmem:[%s3281_s1 + $0x8] sm:$0xff]  ;;  %vm1147_vm3 = vcmask 517120   ;;  %vm1593_vm4 = vcmask 130048  }
  0x11   :  { %98 = vst.msk [vmem:[#allocation2 + $0x10] sm:$0xff] %vm95_vm0, %v3295_v0  ;;  %379 = vmatpush.msra.mxu2 %v2054_v3  ;;  %v2066_v7 = vld [vmem:[%s3281_s1 + $0x78] sm:$0xff]  ;;  %237 = vmatpush.msra.mxu0 %v2033_v4  ;;  %v2052_v10 = vld [vmem:[%s3281_s1 + $0x48] sm:$0xff]  ;;  %v2065_v11 = vld [vmem:[%s3281_s1 + $0x70] sm:$0xff]  ;;  %s2020_s19 = sshll.u32 %s3294_s14, 4  ;;  %s2021_s19 = int_to_ptr.hbm [resolvable:$true] %s2020_s19 }
  0x12   :  { %99 = vst.msk [vmem:[#allocation2 + $0x18] sm:$0xff] %vm95_vm0, %v3295_v0  ;;  %302 = vmatpush.msra.mxu1 %v185_v5  ;;  %466 = vmatpush.msra.mxu3 %v2066_v7  ;;  %v2031_v12 = vld [vmem:[%s3281_s1 + $0x20] sm:$0xff]  ;;  %v2064_v15 = vld [vmem:[%s3281_s1 + $0x68] sm:$0xff]  ;;  %v129_v22 = vld [vmem:[%s3280_s0 + $0x10] sm:$0xff] }
  0x13   :  { %102 = vst.msk [vmem:[#allocation2 + $0x28] sm:$0xff] %vm95_vm0, %v3295_v0  ;;  %380 = vmatpush.msra.mxu2 %v2053_v6  ;;  %v183_v13 = vld [vmem:[%s3281_s1] sm:$0xff]  ;;  %238 = vmatpush.msra.mxu0 %v2032_v8  ;;  %v128_v20 = vld [vmem:[%s3280_s0 + $0x8] sm:$0xff]  ;;  %v130_v24 = vld [vmem:[%s3280_s0 + $0x18] sm:$0xff] }
  0x14   :  { %103 = vst.msk [vmem:[#allocation2 + $0x30] sm:$0xff] %vm95_vm0, %v3295_v0  ;;  %303 = vmatpush.msra.mxu1 %v184_v9  ;;  %v2051_v14 = vld [vmem:[%s3281_s1 + $0x40] sm:$0xff]  ;;  %467 = vmatpush.msra.mxu3 %v2065_v11  ;;  %v132_v23 = vld [vmem:[%s3280_s0 + $0x28] sm:$0xff]  ;;  %v133_v29 = vld [vmem:[%s3280_s0 + $0x30] sm:$0xff] }
  0x15   :  { %104 = vst.msk [vmem:[#allocation2 + $0x38] sm:$0xff] %vm95_vm0, %v3295_v0  ;;  %v127_v16 = vld [vmem:[%s3280_s0] sm:$0xff]  ;;  %381 = vmatpush.msra.mxu2 %v2052_v10  ;;  %239 = vmatpush.msra.mxu0 %v2031_v12  ;;  %v134_v30 = vld [vmem:[%s3280_s0 + $0x38] sm:$0xff]  ;;  %v140_v34 = vld [vmem:[%s3280_s0 + $0x68] sm:$0xff] }
  0x16   :  { %105 = vst.msk [vmem:[#allocation2 + $0x40] sm:$0xff] %vm95_vm0, %v3295_v0  ;;  %304 = vmatpush.msra.mxu1 %v183_v13  ;;  %v2063_v17 = vld [vmem:[%s3281_s1 + $0x60] sm:$0xff]  ;;  %468 = vmatpush.msra.mxu3 %v2064_v15  ;;  %v141_v38 = vld [vmem:[%s3280_s0 + $0x70] sm:$0xff]  ;;  %v144_v39 = vld [vmem:[%s3280_s0 + $0x88] sm:$0xff] }
  0x17   :  { %107 = vst.msk [vmem:[#allocation2 + $0x50] sm:$0xff] %vm95_vm0, %v3295_v0  ;;  %382 = vmatpush.msra.mxu2 %v2051_v14  ;;  %v131_v21 = vld [vmem:[%s3280_s0 + $0x20] sm:$0xff]  ;;  %v142_v40 = vld [vmem:[%s3280_s0 + $0x78] sm:$0xff]  ;;  %v145_v41 = vld [vmem:[%s3280_s0 + $0x90] sm:$0xff] }
  0x18   :  { %108 = vst.msk [vmem:[#allocation2 + $0x58] sm:$0xff] %vm95_vm0, %v3295_v0  ;;  %469 = vmatpush.msra.mxu3 %v2063_v17  ;;  %v139_v31 = vld [vmem:[%s3280_s0 + $0x60] sm:$0xff]  ;;  %v2078_v46 = vld [vmem:[%s3281_s1 + $0x98] sm:$0xff]  ;;  %v2077_v54 = vld [vmem:[%s3281_s1 + $0x90] sm:$0xff] }
  0x19   :  { %109 = vst.msk [vmem:[#allocation2 + $0x60] sm:$0xff] %vm95_vm0, %v3295_v0  ;;  %v143_v37 = vld [vmem:[%s3280_s0 + $0x80] sm:$0xff]  ;;  %552 = vmatpush.msrb.mxu0 %v2078_v46  ;;  %v146_v47 = vld [vmem:[%s3280_s0 + $0x98] sm:$0xff]  ;;  %v2101_v56 = vld [vmem:[%s3281_s1 + $0xd0] sm:$0xff] }
  0x1a   :  { %110 = vst.msk [vmem:[#allocation2 + $0x68] sm:$0xff] %vm95_vm0, %v3295_v0  ;;  %v135_v52 = vld [vmem:[%s3280_s0 + $0x40] sm:$0xff]  ;;  %v2102_v53 = vld [vmem:[%s3281_s1 + $0xd8] sm:$0xff]  ;;  %v2076_v58 = vld [vmem:[%s3281_s1 + $0x88] sm:$0xff] }
  0x1b   :  { %151 = vst.msk [vmem:[#allocation2 + $0x1] sm:$0xff] %vm95_vm0, %v127_v16  ;;  %v2090_v55 = vld [vmem:[%s3281_s1 + $0xb8] sm:$0xff]  ;;  %725 = vmatpush.msrb.mxu2 %v2102_v53  ;;  %553 = vmatpush.msrb.mxu0 %v2077_v54  ;;  %v2089_v59 = vld [vmem:[%s3281_s1 + $0xb0] sm:$0xff]  ;;  %v2100_v60 = vld [vmem:[%s3281_s1 + $0xc8] sm:$0xff] }
  0x1c   :  { %112 = vst.msk [vmem:[#allocation2 + $0x78] sm:$0xff] %vm95_vm0, %v3295_v0  ;;  %v2114_v57 = vld [vmem:[%s3281_s1 + $0xf8] sm:$0xff]  ;;  %638 = vmatpush.msrb.mxu1 %v2090_v55  ;;  %v2113_v61 = vld [vmem:[%s3281_s1 + $0xf0] sm:$0xff]  ;;  %v2075_v62 = vld [vmem:[%s3281_s1 + $0x80] sm:$0xff] }
  0x1d   :  { %113 = vst.msk [vmem:[#allocation2 + $0x80] sm:$0xff] %vm95_vm0, %v3295_v0  ;;  %811 = vmatpush.msrb.mxu3 %v2114_v57  ;;  %726 = vmatpush.msrb.mxu2 %v2101_v56  ;;  %v2088_v63 = vld [vmem:[%s3281_s1 + $0xa8] sm:$0xff]  ;;  %v2099_v6 = vld [vmem:[%s3281_s1 + $0xc0] sm:$0xff]  ;;  %v137_v14 = vld [vmem:[%s3280_s0 + $0x50] sm:$0xff] }
  0x1e   :  { %114 = vst.msk [vmem:[#allocation2 + $0x88] sm:$0xff] %vm95_vm0, %v3295_v0  ;;  %554 = vmatpush.msrb.mxu0 %v2076_v58  ;;  %639 = vmatpush.msrb.mxu1 %v2089_v59  ;;  %v2112_v3 = vld [vmem:[%s3281_s1 + $0xe8] sm:$0xff]  ;;  %v2087_v8 = vld [vmem:[%s3281_s1 + $0xa0] sm:$0xff] }
  0x1f   :  { %115 = vst.msk [vmem:[#allocation2 + $0x90] sm:$0xff] %vm95_vm0, %v3295_v0  ;;  %812 = vmatpush.msrb.mxu3 %v2113_v61  ;;  %727 = vmatpush.msrb.mxu2 %v2100_v60  ;;  %v136_v7 = vld [vmem:[%s3280_s0 + $0x48] sm:$0xff]  ;;  %v2111_v9 = vld [vmem:[%s3281_s1 + $0xe0] sm:$0xff] }
  0x20   :  { %117 = vst.msk [vmem:[#allocation2 + $0xa0] sm:$0xff] %vm95_vm0, %v3295_v0  ;;  %555 = vmatpush.msrb.mxu0 %v2075_v62  ;;  %640 = vmatpush.msrb.mxu1 %v2088_v63  ;;  %v2124_v46 = vld [vmem:[%s3281_s1 + $0x108] sm:$0xff] }
  0x21   :  { %118 = vst.msk [vmem:[#allocation2 + $0xa8] sm:$0xff] %vm95_vm0, %v3295_v0  ;;  %813 = vmatpush.msrb.mxu3 %v2112_v3  ;;  %728 = vmatpush.msrb.mxu2 %v2099_v6 }
  0x22   :  { %v187_v18 = vld [vmem:[#allocation2 + $0x1] sm:$0xff]  ;;  %119 = vst.msk [vmem:[#allocation2 + $0xb0] sm:$0xff] %vm95_vm0, %v3295_v0  ;;  %641 = vmatpush.msrb.mxu1 %v2087_v8 }
  0x23   :  { %v175_v19 = vld [vmem:[#allocation2] sm:$0xff]  ;;  %2035 = vmatmul.msk.f32.vlgmr.msra.gmra.mxu0 %vm95_vm0, %v187_v18  ;;  %120 = vst.msk [vmem:[#allocation2 + $0xb8] sm:$0xff] %vm95_vm0, %v3295_v0  ;;  %814 = vmatpush.msrb.mxu3 %v2111_v9 }
  0x24   :  { %2043 = vmatmul.msk.f32.vlgmr.msra.gmra.mxu1 %vm95_vm0, %v175_v19  ;;  %122 = vst.msk [vmem:[#allocation2 + $0xc8] sm:$0xff] %vm95_vm0, %v3295_v0  ;;  %v138_v19 = vld [vmem:[%s3280_s0 + $0x58] sm:$0xff] }
  0x25   :  { %123 = vst.msk [vmem:[#allocation2 + $0xd0] sm:$0xff] %vm95_vm0, %v3295_v0 }
  0x26   :  { %124 = vst.msk [vmem:[#allocation2 + $0xd8] sm:$0xff] %vm95_vm0, %v3295_v0 }
  0x27   :  { %125 = vst.msk [vmem:[#allocation2 + $0xe0] sm:$0xff] %vm95_vm0, %v3295_v0 }
  0x28   :  { %1469 = vst.msk [vmem:[#allocation4] sm:$0xff] %vm95_vm0, %v3295_v0 }
  0x29   :  { %1471 = vst.msk [vmem:[#allocation4 + $0x10] sm:$0xff] %vm95_vm0, %v3295_v0 }
  0x2a   :  { %152 = vst.msk [vmem:[#allocation2 + $0x9] sm:$0xff] %vm95_vm0, %v128_v20 }
  0x2b   :  { %155 = vst.msk [vmem:[#allocation2 + $0x29] sm:$0xff] %vm95_vm0, %v131_v21 }
  0x2c   :  { %153 = vst.msk [vmem:[#allocation2 + $0x11] sm:$0xff] %vm95_vm0, %v129_v22 }
  0x2d   :  { %156 = vst.msk [vmem:[#allocation2 + $0x31] sm:$0xff] %vm95_vm0, %v132_v23 }
  0x2e   :  { %101 = vst.msk [vmem:[#allocation2 + $0x20] sm:$0x3] %vm100_vm1, %v3295_v0 }
  0x2f   :  { %154 = vst.msk [vmem:[#allocation2 + $0x19] sm:$0xff] %vm95_vm0, %v130_v24  ;;  %v147_v24 = vld [vmem:[%s3280_s0 + $0xa0] sm:$0xff] }
  0x30   :  { %106 = vst.msk [vmem:[#allocation2 + $0x48] sm:$0x3] %vm100_vm1, %v3295_v0 }
  0x31   :  { %v330_v25 = vld [vmem:[#allocation2 + $0x2] sm:$0xff]  ;;  %111 = vst.msk [vmem:[#allocation2 + $0x70] sm:$0x3] %vm100_vm1, %v3295_v0 }
  0x32   :  { %v188_v26 = vld [vmem:[#allocation2 + $0x9] sm:$0xff]  ;;  %2055 = vmatmul.msk.f32.vlgmr.msra.gmra.mxu2 %vm95_vm0, %v330_v25  ;;  %116 = vst.msk [vmem:[#allocation2 + $0x98] sm:$0x3] %vm100_vm1, %v3295_v0 }
  0x33   :  { %v176_v27 = vld [vmem:[#allocation2 + $0x8] sm:$0xff]  ;;  %2036 = vmatmul.msk.f32.gmra.mxu0 %vm95_vm0, %v188_v26  ;;  %121 = vst.msk [vmem:[#allocation2 + $0xc0] sm:$0x3] %vm100_vm1, %v3295_v0  ;;  %v189_v33 = vld [vmem:[#allocation2 + $0x11] sm:$0xff] }
  0x34   :  { %v417_v28 = vld [vmem:[#allocation2 + $0x28] sm:$0xff]  ;;  %2044 = vmatmul.msk.f32.gmra.mxu1 %vm95_vm0, %v176_v27  ;;  %126 = vst.msk [vmem:[#allocation2 + $0xe8] sm:$0x3] %vm100_vm1, %v3295_v0  ;;  %v418_v35 = vld [vmem:[#allocation2 + $0x30] sm:$0xff] }
  0x35   :  { %2067 = vmatmul.msk.f32.vlgmr.msra.gmra.mxu3 %vm95_vm0, %v417_v28  ;;  %1470 = vst.msk [vmem:[#allocation4 + $0x8] sm:$0x3] %vm100_vm1, %v3295_v0  ;;  %v331_v32 = vld [vmem:[#allocation2 + $0xa] sm:$0xff] }
  0x36   :  { %1472 = vst.msk [vmem:[#allocation4 + $0x18] sm:$0x3] %vm100_vm1, %v3295_v0  ;;  %v177_v36 = vld [vmem:[#allocation2 + $0x10] sm:$0xff]  ;;  %v190_v43 = vld [vmem:[#allocation2 + $0x19] sm:$0xff] }
  0x37   :  { %157 = vst.msk [vmem:[#allocation2 + $0x39] sm:$0xff] %vm95_vm0, %v133_v29  ;;  %v332_v42 = vld [vmem:[#allocation2 + $0x12] sm:$0xff]  ;;  %v333_v48 = vld [vmem:[#allocation2 + $0x1a] sm:$0xff]  ;;  %v503_v21 = vld [vmem:[#allocation2 + $0x29] sm:$0xff] }
  0x38   :  { %158 = vst.msk [vmem:[#allocation2 + $0x41] sm:$0xff] %vm95_vm0, %v134_v30  ;;  %v178_v45 = vld [vmem:[#allocation2 + $0x18] sm:$0xff]  ;;  %v589_v23 = vld [vmem:[#allocation2 + $0x2a] sm:$0xff] }
  0x39   :  { %163 = vst.msk [vmem:[#allocation2 + $0x79] sm:$0xff] %vm95_vm0, %v139_v31  ;;  %v504_v26 = vld [vmem:[#allocation2 + $0x31] sm:$0xff]  ;;  %v148_v29 = vld [vmem:[%s3280_s0 + $0xa8] sm:$0xff] }
  0x3a   :  { %2056 = vmatmul.msk.f32.gmra.mxu2 %vm95_vm0, %v331_v32  ;;  %164 = vst.msk [vmem:[#allocation2 + $0x81] sm:$0xff] %vm95_vm0, %v140_v34  ;;  %v149_v34 = vld [vmem:[%s3280_s0 + $0xb0] sm:$0xff] }
  0x3b   :  { %2037 = vmatmul.msk.f32.gmra.mxu0 %vm95_vm0, %v189_v33  ;;  %167 = vst.msk [vmem:[#allocation2 + $0xa1] sm:$0xff] %vm95_vm0, %v143_v37 }
  0x3c   :  { %2045 = vmatmul.msk.f32.gmra.mxu1 %vm95_vm0, %v177_v36  ;;  %165 = vst.msk [vmem:[#allocation2 + $0x89] sm:$0xff] %vm95_vm0, %v141_v38 }
  0x3d   :  { %2068 = vmatmul.msk.f32.gmra.mxu3 %vm95_vm0, %v418_v35  ;;  %168 = vst.msk [vmem:[#allocation2 + $0xa9] sm:$0xff] %vm95_vm0, %v144_v39  ;;  %v150_v39 = vld [vmem:[%s3280_s0 + $0xb8] sm:$0xff] }
  0x3e   :  { %166 = vst.msk [vmem:[#allocation2 + $0x91] sm:$0xff] %vm95_vm0, %v142_v40  ;;  %v419_v44 = vld [vmem:[#allocation2 + $0x38] sm:$0xff] }
  0x3f   :  { %169 = vst.msk [vmem:[#allocation2 + $0xb1] sm:$0xff] %vm95_vm0, %v145_v41  ;;  %v420_v50 = vld [vmem:[#allocation2 + $0x40] sm:$0xff]  ;;  %v590_v28 = vld [vmem:[#allocation2 + $0x32] sm:$0xff] }
  0x40   :  { %170 = vst.msk [vmem:[#allocation2 + $0xb9] sm:$0xff] %vm95_vm0, %v146_v47  ;;  %v191_v49 = vld [vmem:[#allocation2 + $0x79] sm:$0xff]  ;;  %v506_v36 = vld [vmem:[#allocation2 + $0x41] sm:$0xff] }
  0x41   :  { %v179_v51 = vld [vmem:[#allocation2 + $0x78] sm:$0xff]  ;;  %159 = vst.msk [vmem:[#allocation2 + $0x51] sm:$0xff] %vm95_vm0, %v135_v52  ;;  %v192_v2 = vld [vmem:[#allocation2 + $0x81] sm:$0xff] }
  0x42   :  { %2057 = vmatmul.msk.f32.gmra.mxu2 %vm95_vm0, %v332_v42  ;;  %v334_v1 = vld [vmem:[#allocation2 + $0x7a] sm:$0xff]  ;;  %160 = vst.msk [vmem:[#allocation2 + $0x59] sm:$0xff] %vm95_vm0, %v136_v7  ;;  %v592_v38 = vld [vmem:[#allocation2 + $0x42] sm:$0xff] }
  0x43   :  { %2038 = vmatmul.msk.f32.gmra.mxu0 %vm95_vm0, %v190_v43  ;;  %v421_v4 = vld [vmem:[#allocation2 + $0xa0] sm:$0xff]  ;;  %v193_v11 = vld [vmem:[#allocation2 + $0x89] sm:$0xff]  ;;  %161 = vst.msk [vmem:[#allocation2 + $0x61] sm:$0xff] %vm95_vm0, %v137_v14  ;;  %v2126_v40 = vld [vmem:[%s3281_s1 + $0x118] sm:$0xff] }
  0x44   :  { %2046 = vmatmul.msk.f32.gmra.mxu1 %vm95_vm0, %v178_v45  ;;  %v180_v5 = vld [vmem:[#allocation2 + $0x80] sm:$0xff]  ;;  %v422_v12 = vld [vmem:[#allocation2 + $0xa8] sm:$0xff]  ;;  %162 = vst.msk [vmem:[#allocation2 + $0x69] sm:$0xff] %vm95_vm0, %v138_v19  ;;  %897 = vmatpush.msra.mxu0 %v2126_v40  ;;  %v2125_v45 = vld [vmem:[%s3281_s1 + $0x110] sm:$0xff] }
  0x45   :  { %2069 = vmatmul.msk.f32.gmra.mxu3 %vm95_vm0, %v419_v44  ;;  %v335_v10 = vld [vmem:[#allocation2 + $0x82] sm:$0xff]  ;;  %v336_v15 = vld [vmem:[#allocation2 + $0x8a] sm:$0xff]  ;;  %v337_v20 = vld [vmem:[#allocation2 + $0x92] sm:$0xff]  ;;  %171 = vst.msk [vmem:[#allocation2 + $0xc9] sm:$0xff] %vm95_vm0, %v147_v24 }
  0x46   :  { %v181_v13 = vld [vmem:[#allocation2 + $0x88] sm:$0xff]  ;;  %v194_v16 = vld [vmem:[#allocation2 + $0x91] sm:$0xff]  ;;  %172 = vst.msk [vmem:[#allocation2 + $0xd1] sm:$0xff] %vm95_vm0, %v148_v29  ;;  %v505_v31 = vld [vmem:[#allocation2 + $0x39] sm:$0xff]  ;;  %898 = vmatpush.msra.mxu0 %v2125_v45 }
  0x47   :  { %v423_v17 = vld [vmem:[#allocation2 + $0xb0] sm:$0xff]  ;;  %v424_v22 = vld [vmem:[#allocation2 + $0xb8] sm:$0xff]  ;;  %173 = vst.msk [vmem:[#allocation2 + $0xd9] sm:$0xff] %vm95_vm0, %v149_v34  ;;  %v507_v42 = vld [vmem:[#allocation2 + $0xa1] sm:$0xff] }
  0x48   :  { %v182_v18 = vld [vmem:[#allocation2 + $0x90] sm:$0xff]  ;;  %v591_v33 = vld [vmem:[#allocation2 + $0x3a] sm:$0xff]  ;;  %174 = vst.msk [vmem:[#allocation2 + $0xe1] sm:$0xff] %vm95_vm0, %v150_v39  ;;  %v593_v44 = vld [vmem:[#allocation2 + $0xa2] sm:$0xff]  ;;  %899 = vmatpush.msra.mxu0 %v2124_v46 }
  0x49   :  { %v676_v25 = vld [vmem:[#allocation2 + $0x50] sm:$0xff]  ;;  %v677_v30 = vld [vmem:[#allocation2 + $0x58] sm:$0xff]  ;;  %v2123_v47 = vld [vmem:[%s3281_s1 + $0x100] sm:$0xff] }
  0x4a   :  { %2058 = vmatmul.msk.f32.gmra.mxu2 %vm95_vm0, %v333_v48  ;;  %v762_v27 = vld [vmem:[#allocation2 + $0x51] sm:$0xff]  ;;  %v763_v32 = vld [vmem:[#allocation2 + $0x59] sm:$0xff]  ;;  %v764_v37 = vld [vmem:[#allocation2 + $0x61] sm:$0xff]  ;;  %900 = vmatpush.msra.mxu0 %v2123_v47 }
  0x4b   :  { %2039 = vmatmul.msk.f32.gmra.mxu0 %vm95_vm0, %v191_v49  ;;  %v678_v35 = vld [vmem:[#allocation2 + $0x60] sm:$0xff]  ;;  %v679_v41 = vld [vmem:[#allocation2 + $0x68] sm:$0xff]  ;;  %v509_v53 = vld [vmem:[#allocation2 + $0xb1] sm:$0xff] }
  0x4c   :  { %2047 = vmatmul.msk.f32.gmra.mxu1 %vm95_vm0, %v179_v51  ;;  %v765_v43 = vld [vmem:[#allocation2 + $0x69] sm:$0xff]  ;;  %v595_v55 = vld [vmem:[#allocation2 + $0xb2] sm:$0xff]  ;;  %v596_v59 = vld [vmem:[#allocation2 + $0xba] sm:$0xff] }
  0x4d   :  { %2070 = vmatmul.msk.f32.gmra.mxu3 %vm95_vm0, %v420_v50  ;;  %v680_v48 = vld [vmem:[#allocation2 + $0xc8] sm:$0xff]  ;;  %v681_v52 = vld [vmem:[#allocation2 + $0xd0] sm:$0xff]  ;;  %v510_v57 = vld [vmem:[#allocation2 + $0xb9] sm:$0xff] }
  0x4e   :  { %v508_v49 = vld [vmem:[#allocation2 + $0xa9] sm:$0xff]  ;;  %v767_v54 = vld [vmem:[#allocation2 + $0xd1] sm:$0xff]  ;;  %v768_v58 = vld [vmem:[#allocation2 + $0xd9] sm:$0xff] }
  0x4f   :  { %v766_v50 = vld [vmem:[#allocation2 + $0xc9] sm:$0xff]  ;;  %v682_v56 = vld [vmem:[#allocation2 + $0xd8] sm:$0xff]  ;;  %v683_v62 = vld [vmem:[#allocation2 + $0xe0] sm:$0xff] }
  0x50   :  { %v594_v51 = vld [vmem:[#allocation2 + $0xaa] sm:$0xff]  ;;  %v848_v63 = vld [vmem:[#allocation2 + $0x52] sm:$0xff]  ;;  %v849_v3 = vld [vmem:[#allocation2 + $0x5a] sm:$0xff] }
  0x51   :  { %v850_v8 = vld [vmem:[#allocation2 + $0x62] sm:$0xff] }
  0x52   :  { %2059 = vmatmul.msk.f32.gmra.mxu2 %vm95_vm0, %v334_v1  ;;  %v769_v1 = vld [vmem:[#allocation2 + $0xe1] sm:$0xff] }
  0x53   :  { %2040 = vmatmul.msk.f32.gmra.mxu0 %vm95_vm0, %v192_v2 }
  0x54   :  { %2048 = vmatmul.msk.f32.gmra.mxu1 %vm95_vm0, %v180_v5 }
  0x55   :  { %2071 = vmatmul.msk.f32.gmra.mxu3 %vm95_vm0, %v421_v4 }
  0x5a   :  { %2060 = vmatmul.msk.f32.gmra.mxu2 %vm95_vm0, %v335_v10 }
  0x5b   :  { %2041 = vmatmul.msk.f32.gmra.mxu0 %vm95_vm0, %v193_v11 }
  0x5c   :  { %2049 = vmatmul.msk.f32.gmra.mxu1 %vm95_vm0, %v181_v13  ;;  %v851_v13 = vld [vmem:[#allocation2 + $0x6a] sm:$0xff] }
  0x5d   :  { %2072 = vmatmul.msk.f32.gmra.mxu3 %vm95_vm0, %v422_v12 }
  0x62   :  { %2061 = vmatmul.msk.f32.gmra.mxu2 %vm95_vm0, %v336_v15 }
  0x63   :  { %2042 = vmatmul.msk.f32.gmra.mxu0 %vm95_vm0, %v194_v16 }
  0x64   :  { %2050 = vmatmul.msk.f32.gmra.mxu1 %vm95_vm0, %v182_v18  ;;  %v852_v18 = vld [vmem:[#allocation2 + $0xca] sm:$0xff] }
  0x65   :  { %2073 = vmatmul.msk.f32.gmra.mxu3 %vm95_vm0, %v423_v17 }
  0x6a   :  { %2062 = vmatmul.msk.f32.gmra.mxu2 %vm95_vm0, %v337_v20 }
  0x6b   :  { %2079 = vmatmul.msk.f32.vlgmr.msrb.gmra.mxu0 %vm95_vm0, %v503_v21 }
  0x6c   :  { %2091 = vmatmul.msk.f32.vlgmr.msrb.gmra.mxu1 %vm95_vm0, %v589_v23  ;;  %v853_v23 = vld [vmem:[#allocation2 + $0xd2] sm:$0xff] }
  0x6d   :  { %2074 = vmatmul.msk.f32.gmra.mxu3 %vm95_vm0, %v424_v22 }
  0x72   :  { %2103 = vmatmul.msk.f32.vlgmr.msrb.gmra.mxu2 %vm95_vm0, %v676_v25 }
  0x73   :  { %2080 = vmatmul.msk.f32.gmra.mxu0 %vm95_vm0, %v504_v26 }
  0x74   :  { %2092 = vmatmul.msk.f32.gmra.mxu1 %vm95_vm0, %v590_v28  ;;  %v854_v28 = vld [vmem:[#allocation2 + $0xda] sm:$0xff] }
  0x75   :  { %2115 = vmatmul.msk.f32.vlgmr.msrb.gmra.mxu3 %vm95_vm0, %v762_v27 }
  0x7a   :  { %2104 = vmatmul.msk.f32.gmra.mxu2 %vm95_vm0, %v677_v30 }
  0x7b   :  { %2081 = vmatmul.msk.f32.gmra.mxu0 %vm95_vm0, %v505_v31 }
  0x7c   :  { %2093 = vmatmul.msk.f32.gmra.mxu1 %vm95_vm0, %v591_v33  ;;  %v855_v33 = vld [vmem:[#allocation2 + $0xe2] sm:$0xff] }
  0x7d   :  { %2116 = vmatmul.msk.f32.gmra.mxu3 %vm95_vm0, %v763_v32 }
  0x82   :  { %2105 = vmatmul.msk.f32.gmra.mxu2 %vm95_vm0, %v678_v35 }
  0x83   :  { %2082 = vmatmul.msk.f32.gmra.mxu0 %vm95_vm0, %v506_v36 }
  0x84   :  { %2094 = vmatmul.msk.f32.gmra.mxu1 %vm95_vm0, %v592_v38 }
  0x85   :  { %2117 = vmatmul.msk.f32.gmra.mxu3 %vm95_vm0, %v764_v37 }
  0x8a   :  { %2106 = vmatmul.msk.f32.gmra.mxu2 %vm95_vm0, %v679_v41 }
  0x8b   :  { %2083 = vmatmul.msk.f32.gmra.mxu0 %vm95_vm0, %v507_v42 }
  0x8c   :  { %2095 = vmatmul.msk.f32.gmra.mxu1 %vm95_vm0, %v593_v44 }
  0x8d   :  { %2118 = vmatmul.msk.f32.gmra.mxu3 %vm95_vm0, %v765_v43 }
  0x92   :  { %2107 = vmatmul.msk.f32.gmra.mxu2 %vm95_vm0, %v680_v48 }
  0x93   :  { %2084 = vmatmul.msk.f32.gmra.mxu0 %vm95_vm0, %v508_v49 }
  0x94   :  { %2096 = vmatmul.msk.f32.gmra.mxu1 %vm95_vm0, %v594_v51 }
  0x95   :  { %2119 = vmatmul.msk.f32.gmra.mxu3 %vm95_vm0, %v766_v50 }
  0x9a   :  { %2108 = vmatmul.msk.f32.gmra.mxu2 %vm95_vm0, %v681_v52 }
  0x9b   :  { %2085 = vmatmul.msk.f32.gmra.mxu0 %vm95_vm0, %v509_v53 }
  0x9c   :  { %2097 = vmatmul.msk.f32.gmra.mxu1 %vm95_vm0, %v595_v55 }
  0x9d   :  { %2120 = vmatmul.msk.f32.gmra.mxu3 %vm95_vm0, %v767_v54 }
  0xa0   :  { %v241_v60 = vpop.f32.mrf.mxu0 }
  0xa1   :  { %v306_v61 = vpop.f32.mrf.mxu1 }
  0xa2   :  { %2109 = vmatmul.msk.f32.gmra.mxu2 %vm95_vm0, %v682_v56  ;;  %v307_v37 = vadd.f32 %v306_v61, %v241_v60 }
  0xa3   :  { %2086 = vmatmul.msk.f32.gmra.mxu0 %vm95_vm0, %v510_v57 }
  0xa4   :  { %2098 = vmatmul.msk.f32.gmra.mxu1 %vm95_vm0, %v596_v59 }
  0xa5   :  { %2121 = vmatmul.msk.f32.gmra.mxu3 %vm95_vm0, %v768_v58 }
  0xaa   :  { %2110 = vmatmul.msk.f32.gmra.mxu2 %vm95_vm0, %v683_v62 }
  0xab   :  { %2127 = vmatmul.msk.f32.vlgmr.msra.gmra.mxu0 %vm95_vm0, %v848_v63 }
  0xad   :  { %2122 = vmatmul.msk.f32.gmra.mxu3 %vm95_vm0, %v769_v1 }
  0xb0   :  { %v2768_v2 = vpop.f32.mrf.mxu0 }
  0xb1   :  { %v2770_v4 = vpop.f32.mrf.mxu1 }
  0xb3   :  { %2128 = vmatmul.msk.f32.gmra.mxu0 %vm95_vm0, %v849_v3 }
  0xb5   :  { %v384_v5 = vpop.f32.mrf.mxu2 }
  0xb6   :  { %v408_v39 = vadd.f32 %v384_v5, %v307_v37 }
  0xb8   :  { %v471_v6 = vpop.f32.mrf.mxu3  ;;  %v2773_v7 = vpop.f32.mrf.mxu0 }
  0xb9   :  { %v2775_v9 = vpop.f32.mrf.mxu1  ;;  %v495_v41 = vadd.f32 %v471_v6, %v408_v39 }
  0xbb   :  { %2129 = vmatmul.msk.f32.gmra.mxu0 %vm95_vm0, %v850_v8 }
  0xbd   :  { %v2778_v10 = vpop.f32.mrf.mxu2 }
  0xc0   :  { %v2780_v11 = vpop.f32.mrf.mxu3  ;;  %v2782_v12 = vpop.f32.mrf.mxu0 }
  0xc1   :  { %v2784_v14 = vpop.f32.mrf.mxu1 }
  0xc3   :  { %2130 = vmatmul.msk.f32.gmra.mxu0 %vm95_vm0, %v851_v13 }
  0xc5   :  { %v2787_v15 = vpop.f32.mrf.mxu2 }
  0xc8   :  { %v2789_v16 = vpop.f32.mrf.mxu3  ;;  %v2791_v17 = vpop.f32.mrf.mxu0 }
  0xc9   :  { %v2794_v19 = vpop.f32.mrf.mxu1 }
  0xcb   :  { %2131 = vmatmul.msk.f32.gmra.mxu0 %vm95_vm0, %v852_v18 }
  0xcd   :  { %v2796_v20 = vpop.f32.mrf.mxu2 }
  0xd0   :  { %v2798_v21 = vpop.f32.mrf.mxu3  ;;  %v256_v22 = vpop.f32.mrf.mxu0 }
  0xd1   :  { %v321_v25 = vpop.f32.mrf.mxu1 }
  0xd3   :  { %2132 = vmatmul.msk.f32.gmra.mxu0 %vm95_vm0, %v853_v23 }
  0xd5   :  { %v2801_v24 = vpop.f32.mrf.mxu2 }
  0xd8   :  { %v2803_v26 = vpop.f32.mrf.mxu3  ;;  %v259_v27 = vpop.f32.mrf.mxu0 }
  0xd9   :  { %v324_v31 = vpop.f32.mrf.mxu1 }
  0xdb   :  { %2133 = vmatmul.msk.f32.gmra.mxu0 %vm95_vm0, %v854_v28 }
  0xdd   :  { %v399_v29 = vpop.f32.mrf.mxu2 }
  0xe0   :  { %v2806_v30 = vpop.f32.mrf.mxu3  ;;  %v262_v32 = vpop.f32.mrf.mxu0 }
  0xe1   :  { %v327_v38 = vpop.f32.mrf.mxu1 }
  0xe3   :  { %2134 = vmatmul.msk.f32.gmra.mxu0 %vm95_vm0, %v855_v33 }
  0xe5   :  { %v402_v34 = vpop.f32.mrf.mxu2 }
  0xe8   :  { %v489_v35 = vpop.f32.mrf.mxu3  ;;  %v557_v36 = vpop.f32.mrf.mxu0 }
  0xe9   :  { %v581_v44 = vadd.f32 %v557_v36, %v495_v41  ;;  %v643_v45 = vpop.f32.mrf.mxu1 }
  0xeb   :  { %v667_v46 = vadd.f32 %v643_v45, %v581_v44  ;;  %v325_v44 = vadd.f32 %v324_v31, %v259_v27  ;;  %v313_v27 = vadd.f32 %v2775_v9, %v2773_v7  ;;  %v3301_v9 = vmov 0.0  }
  0xec   :  { %1145 = vst.msk [vmem:[#allocation3] sm:$0xff] %vm958_vm2, %v3301_v9 }
  0xed   :  { %v405_v40 = vpop.f32.mrf.mxu2  ;;  %1146 = vst.msk [vmem:[#allocation3 + $0x8] sm:$0xff] %vm958_vm2, %v3301_v9 }
  0xee   :  { %1149 = vst.msk [vmem:[#allocation3 + $0x18] sm:$0xff] %vm958_vm2, %v3301_v9 }
  0xef   :  { %1150 = vst.msk [vmem:[#allocation3 + $0x20] sm:$0xff] %vm958_vm2, %v3301_v9 }
  0xf0   :  { %v492_v42 = vpop.f32.mrf.mxu3  ;;  %v2809_v43 = vpop.f32.mrf.mxu0  ;;  %1148 = vst.msk [vmem:[#allocation3 + $0x10] sm:$0x3] %vm1147_vm3, %v3301_v9 }
  0xf1   :  { %v2813_v56 = vpop.f32.mrf.mxu1  ;;  %1151 = vst.msk [vmem:[#allocation3 + $0x28] sm:$0x3] %vm1147_vm3, %v3301_v9  ;;  %v1160_v9 = vld [vmem:[%s3282_s2] sm:$0xff] }
  0xf5   :  { %v730_v47 = vpop.f32.mrf.mxu2 }
  0xf6   :  { %v754_v48 = vadd.f32 %v730_v47, %v667_v46  ;;  %v322_v46 = vadd.f32 %v321_v25, %v256_v22  ;;  %v414_v47 = vadd.f32 %v402_v34, %v325_v44 }
  0xf8   :  { %v816_v49 = vpop.f32.mrf.mxu3  ;;  %v2811_v50 = vpop.f32.mrf.mxu0 }
  0xf9   :  { %v840_v51 = vadd.f32 %v816_v49, %v754_v48  ;;  %v2819_v60 = vpop.f32.mrf.mxu1  ;;  %v328_v48 = vadd.f32 %v327_v38, %v262_v32 }
  0xfb   :  { %v415_v0 = vadd.f32 %v405_v40, %v328_v48 }
  0xfd   :  { %v2815_v57 = vpop.f32.mrf.mxu2  ;;  %v502_v32 = vadd.f32 %v492_v42, %v415_v0 }
 0x100   :  { %v566_v52 = vpop.f32.mrf.mxu0  ;;  %v2817_v58 = vpop.f32.mrf.mxu3 }
 0x101   :  { %3297 = vst [vmem:[#allocation15_spill] sm:$0xff] %v2817_v58  ;;  %v652_v3 = vpop.f32.mrf.mxu1  ;;  %v501_v58 = vadd.f32 %v489_v35, %v414_v47 }
 0x105   :  { %v2821_v61 = vpop.f32.mrf.mxu2 }
 0x108   :  { %v569_v53 = vpop.f32.mrf.mxu0  ;;  %v2825_v1 = vpop.f32.mrf.mxu3 }
 0x109   :  { %v655_v13 = vpop.f32.mrf.mxu1 }
 0x10d   :  { %v2827_v5 = vpop.f32.mrf.mxu2 }
 0x110   :  { %v572_v54 = vpop.f32.mrf.mxu0  ;;  %v2831_v8 = vpop.f32.mrf.mxu3 }
 0x111   :  { %v658_v36 = vpop.f32.mrf.mxu1 }
 0x115   :  { %v742_v23 = vpop.f32.mrf.mxu2 }
 0x118   :  { %v575_v55 = vpop.f32.mrf.mxu0  ;;  %v2835_v28 = vpop.f32.mrf.mxu3 }
 0x119   :  { %v661_v45 = vpop.f32.mrf.mxu1  ;;  %v587_v34 = vadd.f32 %v575_v55, %v501_v58 }
 0x11d   :  { %v745_v37 = vpop.f32.mrf.mxu2 }
 0x120   :  { %v578_v59 = vpop.f32.mrf.mxu0  ;;  %v831_v39 = vpop.f32.mrf.mxu3 }
 0x121   :  { %v664_v7 = vpop.f32.mrf.mxu1 }
 0x125   :  { %v748_v49 = vpop.f32.mrf.mxu2 }
 0x128   :  { %v902_v62 = vpop.f32.mrf.mxu0  ;;  %v834_v31 = vpop.f32.mrf.mxu3 }
 0x129   :  { %v2823_v63 = vadd.f32 %v902_v62, %v840_v51  ;;  %v319_v51 = vadd.f32 %v2794_v19, %v2791_v17  ;;  %v413_v62 = vadd.f32 %v399_v29, %v322_v46  ;;  %v310_v17 = vadd.f32 %v2770_v4, %v2768_v2 }
 0x12a   :  { %v410_v19 = vadd.f32 %v2787_v15, %v313_v27 }
 0x12b   :  { %3298 = vst [vmem:[#allocation16_spill] sm:$0xff] %v2823_v63  ;;  %v500_v25 = vadd.f32 %v2806_v30, %v413_v62  ;;  %v409_v29 = vadd.f32 %v2778_v10, %v310_v17  ;;  %v673_v30 = vadd.f32 %v661_v45, %v587_v34  ;;  %v1065_v34 = vld [vmem:[%s3288_s8 + $0x78] sm:$0xff] }
 0x12c   :  { %v497_v2 = vadd.f32 %v2789_v16, %v410_v19  ;;  %1066 = vmatpush.msra.mxu3 %v1065_v34  ;;  %v2163_v34 = vld [vmem:[%s3282_s2 + $0x60] sm:$0xff] }
 0x12d   :  { %v751_v4 = vpop.f32.mrf.mxu2  ;;  %v760_v35 = vadd.f32 %v748_v49, %v673_v30  ;;  %v3302_v49 = vld [vmem:[#allocation15_spill] sm:$0xff]  ;;  %v1062_v30 = vld [vmem:[%s3288_s8 + $0x60] sm:$0xff] }
 0x12e   :  { %v583_v40 = vadd.f32 %v2811_v50, %v497_v2  ;;  %v2158_v2 = vld [vmem:[%s3288_s8 + $0xf8] sm:$0xff] }
 0x130   :  { %v2829_v6 = vpop.f32.mrf.mxu0  ;;  %v837_v55 = vpop.f32.mrf.mxu3 }
 0x131   :  { %3299 = vst [vmem:[#allocation17_spill] sm:$0xff] %v2829_v6  ;;  %v316_v6 = vadd.f32 %v2784_v14, %v2782_v12  ;;  %v586_v14 = vadd.f32 %v572_v54, %v500_v25 }
 0x132   :  { %v3305_v17 = vld [vmem:[#allocation16_spill] sm:$0xff] }
 0x133   :  { %v411_v22 = vadd.f32 %v2796_v20, %v316_v6  ;;  %v672_v10 = vadd.f32 %v658_v36, %v586_v14  ;;  %v846_v6 = vadd.f32 %v834_v31, %v760_v35  ;;  %v1064_v14 = vld [vmem:[%s3288_s8 + $0x70] sm:$0xff]  ;;  %v1059_v35 = vld [vmem:[%s3288_s8 + $0x48] sm:$0xff] }
 0x134   :  { %1067 = vmatpush.msra.mxu3 %v1064_v14  ;;  %v2182_v14 = vld [vmem:[%s3282_s2 + $0xb8] sm:$0xff] }
 0x135   :  { %v498_v20 = vadd.f32 %v2798_v21, %v411_v22  ;;  %v496_v21 = vadd.f32 %v2780_v11, %v409_v29  ;;  %v1063_v29 = vld [vmem:[%s3288_s8 + $0x68] sm:$0xff]  ;;  %1296 = vmatpush.msrb.mxu0 %v2182_v14 }
 0x136   :  { %1068 = vmatpush.msra.mxu3 %v1063_v29  ;;  %v2161_v29 = vld [vmem:[%s3282_s2 + $0x50] sm:$0xff] }
 0x137   :  { %v582_v16 = vadd.f32 %v2809_v43, %v496_v21  ;;  %v2234_v43 = vld [vmem:[%s3284_s4] ss:$0 sm:$0xff]  ;;  %v1002_v21 = vld [vmem:[#allocation8 + $0x28] sm:$0xff] }
 0x138   :  { %v2833_v18 = vpop.f32.mrf.mxu0  ;;  %v938_v19 = vadd.f32 %v2234_v43, %v3305_v17  ;;  %1069 = vmatpush.msra.mxu3 %v1062_v30  ;;  %v1164_v17 = vld [vmem:[%s3282_s2 + $0x20] sm:$0xff]  ;;  %v2180_v30 = vld [vmem:[%s3282_s2 + $0xa8] sm:$0xff] }
 0x139   :  { %3300 = vst [vmem:[#allocation18_spill] sm:$0xff] %v2833_v18  ;;  %v412_v18 = vadd.f32 %v2801_v24, %v319_v51  ;;  %v588_v24 = vadd.f32 %v578_v59, %v502_v32  ;;  %v668_v11 = vadd.f32 %v2813_v56, %v582_v16  ;;  %v2153_v16 = vld [vmem:[%s3288_s8 + $0xd0] sm:$0xff] }
 0x13b   :  { %v499_v12 = vadd.f32 %v2803_v26, %v412_v18  ;;  %v584_v26 = vadd.f32 %v566_v52, %v498_v20  ;;  %v674_v38 = vadd.f32 %v664_v7, %v588_v24  ;;  %v669_v52 = vadd.f32 %v2819_v60, %v583_v40  ;;  %v1001_v20 = vld [vmem:[#allocation8 + $0x20] sm:$0xff]  ;;  %v955_v40 = vld [vmem:[#allocation8 + $0x8] sm:$0xff] }
 0x13c   :  { %v755_v60 = vadd.f32 %v2815_v57, %v668_v11  ;;  %v3304_v57 = vld [vmem:[#allocation17_spill] sm:$0xff]  ;;  %v946_v7 = vmax.f32 %v938_v19, 0.0  ;;  %v2149_v11 = vld [vmem:[%s3288_s8 + $0xb0] sm:$0xff]  ;;  %v2162_v19 = vld [vmem:[%s3282_s2 + $0x58] sm:$0xff] }
 0x13d   :  { %v585_v0 = vadd.f32 %v569_v53, %v499_v12  ;;  %v759_v53 = vadd.f32 %v745_v37, %v672_v10  ;;  %v761_v54 = vadd.f32 %v751_v4, %v674_v38  ;;  %v670_v58 = vadd.f32 %v652_v3, %v584_v26  ;;  %v1061_v4 = vld [vmem:[%s3288_s8 + $0x58] sm:$0xff]  ;;  %v1060_v26 = vld [vmem:[%s3288_s8 + $0x50] sm:$0xff]  ;;  %v2156_v10 = vld [vmem:[%s3288_s8 + $0xe8] sm:$0xff] }
 0x13e   :  { %v756_v50 = vadd.f32 %v2821_v61, %v669_v52  ;;  %v841_v51 = vadd.f32 %v3302_v49, %v755_v60  ;;  %1070 = vmatpush.msra.mxu3 %v1061_v4  ;;  %v2155_v38 = vld [vmem:[%s3288_s8 + $0xe0] sm:$0xff]  ;;  %v1003_v52 = vld [vmem:[#allocation8 + $0x30] sm:$0xff] }
 0x13f   :  { %v671_v42 = vadd.f32 %v655_v13, %v585_v0  ;;  %v757_v18 = vadd.f32 %v2827_v5, %v670_v58  ;;  %v845_v36 = vadd.f32 %v831_v39, %v759_v53  ;;  %v847_v44 = vadd.f32 %v837_v55, %v761_v54  ;;  %v954_v0 = vld [vmem:[#allocation8] sm:$0xff]  ;;  %v2154_v53 = vld [vmem:[%s3288_s8 + $0xd8] sm:$0xff]  ;;  %v1056_v55 = vld [vmem:[%s3288_s8 + $0x30] sm:$0xff] }
 0x140   :  { %v2837_v33 = vpop.f32.mrf.mxu0  ;;  %v842_v56 = vadd.f32 %v2825_v1, %v756_v50  ;;  %v3303_v62 = vld [vmem:[#allocation18_spill] sm:$0xff]  ;;  %1071 = vmatpush.msra.mxu3 %v1060_v26  ;;  %v1057_v54 = vld [vmem:[%s3288_s8 + $0x38] sm:$0xff]  ;;  %v1050_v60 = vld [vmem:[%s3288_s8] sm:$0xff] }
 0x141   :  { %v758_v59 = vadd.f32 %v742_v23, %v671_v42  ;;  %v843_v5 = vadd.f32 %v2831_v8, %v757_v18  ;;  %v927_v8 = vadd.f32 %v3304_v57, %v841_v51  ;;  %v1058_v42 = vld [vmem:[%s3288_s8 + $0x40] sm:$0xff]  ;;  %v2152_v58 = vld [vmem:[%s3288_s8 + $0xc8] sm:$0xff]  ;;  %v956_v18 = vld [vmem:[#allocation8 + $0x10] sm:$0xff] }
 0x142   :  { %v928_v27 = vadd.f32 %v3303_v62, %v842_v56  ;;  %1072 = vmatpush.msra.mxu3 %v1059_v35  ;;  %v2148_v50 = vld [vmem:[%s3288_s8 + $0xa8] sm:$0xff]  ;;  %v1166_v49 = vld [vmem:[%s3282_s2 + $0x30] sm:$0xff]  ;;  %v2179_v4 = vld [vmem:[%s3282_s2 + $0xa0] sm:$0xff] }
 0x143   :  { %v844_v13 = vadd.f32 %v2835_v28, %v758_v59  ;;  %v929_v61 = vadd.f32 %v2837_v33, %v843_v5  ;;  %v939_v33 = vadd.f32 %v2234_v43, %v927_v8  ;;  %v1055_v59 = vld [vmem:[%s3288_s8 + $0x28] sm:$0xff]  ;;  %v2146_v5 = vld [vmem:[%s3288_s8 + $0x98] sm:$0xff]  ;;  %v2177_v26 = vld [vmem:[%s3282_s2 + $0x90] sm:$0xff] }
 0x144   :  { %v940_v25 = vadd.f32 %v2234_v43, %v928_v27  ;;  %1073 = vmatpush.msra.mxu3 %v1058_v42  ;;  %v2175_v35 = vld [vmem:[%s3282_s2 + $0x80] sm:$0xff] }
 0x145   :  { %v941_v22 = vadd.f32 %v2234_v43, %v929_v61  ;;  %v947_v24 = vmax.f32 %v939_v33, 0.0  ;;  %v2166_v61 = vld [vmem:[%s3282_s2 + $0x78] sm:$0xff]  ;;  %v2164_v33 = vld [vmem:[%s3282_s2 + $0x68] sm:$0xff] }
 0x146   :  { %v948_v12 = vmax.f32 %v940_v25, 0.0  ;;  %1074 = vmatpush.msra.mxu3 %v1057_v54 }
 0x147   :  { %v949_v32 = vmax.f32 %v941_v22, 0.0 }
 0x148   :  { %v2839_v41 = vpop.f32.mrf.mxu0  ;;  %1075 = vmatpush.msra.mxu3 %v1056_v55 }
 0x149   :  { %v930_v37 = vadd.f32 %v2839_v41, %v844_v13  ;;  %v1004_v13 = vld [vmem:[#allocation8 + $0x38] sm:$0xff] }
 0x14a   :  { %1076 = vmatpush.msra.mxu3 %v1055_v59 }
 0x150   :  { %v917_v63 = vpop.f32.mrf.mxu0 }
 0x151   :  { %v931_v3 = vadd.f32 %v917_v63, %v845_v36  ;;  %v942_v63 = vadd.f32 %v2234_v43, %v930_v37  ;;  %v1054_v36 = vld [vmem:[%s3288_s8 + $0x20] sm:$0xff]  ;;  %v2145_v37 = vld [vmem:[%s3288_s8 + $0x90] sm:$0xff] }
 0x152   :  { %1077 = vmatpush.msra.mxu3 %v1054_v36 }
 0x153   :  { %v943_v48 = vadd.f32 %v2234_v43, %v931_v3  ;;  %v950_v1 = vmax.f32 %v942_v63, 0.0  ;;  %v1051_v3 = vld [vmem:[%s3288_s8 + $0x8] sm:$0xff] }
 0x155   :  { %v951_v41 = vmax.f32 %v943_v48, 0.0  ;;  %v1167_v48 = vld [vmem:[%s3282_s2 + $0x38] sm:$0xff] }
 0x158   :  { %v920_v15 = vpop.f32.mrf.mxu0 }
 0x159   :  { %v932_v45 = vadd.f32 %v920_v15, %v846_v6  ;;  %v2157_v15 = vld [vmem:[%s3288_s8 + $0xf0] sm:$0xff]  ;;  %v2151_v6 = vld [vmem:[%s3288_s8 + $0xc0] sm:$0xff] }
 0x15b   :  { %v944_v39 = vadd.f32 %v2234_v43, %v932_v45  ;;  %v1053_v45 = vld [vmem:[%s3288_s8 + $0x18] sm:$0xff] }
 0x15c   :  { %1078 = vmatpush.msra.mxu3 %v1053_v45 }
 0x15d   :  { %v952_v31 = vmax.f32 %v944_v39, 0.0  ;;  %v2144_v39 = vld [vmem:[%s3288_s8 + $0x88] sm:$0xff] }
 0x160   :  { %v923_v46 = vpop.f32.mrf.mxu0 }
 0x161   :  { %v933_v23 = vadd.f32 %v923_v46, %v847_v44  ;;  %v2150_v44 = vld [vmem:[%s3288_s8 + $0xb8] sm:$0xff]  ;;  %v1052_v46 = vld [vmem:[%s3288_s8 + $0x10] sm:$0xff] }
 0x162   :  { %1079 = vmatpush.msra.mxu3 %v1052_v46 }
 0x163   :  { %v945_v47 = vadd.f32 %v2234_v43, %v933_v23  ;;  %v957_v43 = vld [vmem:[#allocation8 + $0x18] sm:$0xff]  ;;  %v2147_v23 = vld [vmem:[%s3288_s8 + $0xa0] sm:$0xff] }
 0x164   :  { %1080 = vmatpush.msra.mxu3 %v1051_v3 }
 0x165   :  { %v953_v28 = vmax.f32 %v945_v47, 0.0  ;;  %v2143_v47 = vld [vmem:[%s3288_s8 + $0x80] sm:$0xff] }
 0x166   :  { %1081 = vmatpush.msra.mxu3 %v1050_v60 }
 0x167   :  { %979 = vmatpush.msra.mxu1 %v953_v28  ;;  %1025 = vmatpush.msra.mxu2 %v953_v28  ;;  %v2165_v28 = vld [vmem:[%s3282_s2 + $0x70] sm:$0xff] }
 0x168   :  { %1242 = vmatpush.msrb.mxu3 %v1167_v48 }
 0x169   :  { %980 = vmatpush.msra.mxu1 %v952_v31  ;;  %1026 = vmatpush.msra.mxu2 %v952_v31 }
 0x16a   :  { %1243 = vmatpush.msrb.mxu3 %v1166_v49  ;;  %v1405_v49 = vld [vmem:[%s3290_s10 + $0x38] sm:$0xff] }
 0x16b   :  { %981 = vmatpush.msra.mxu1 %v951_v41  ;;  %1027 = vmatpush.msra.mxu2 %v951_v41 }
 0x16d   :  { %982 = vmatpush.msra.mxu1 %v950_v1  ;;  %1028 = vmatpush.msra.mxu2 %v950_v1 }
 0x16f   :  { %983 = vmatpush.msra.mxu1 %v949_v32  ;;  %1029 = vmatpush.msra.mxu2 %v949_v32  ;;  %v1165_v32 = vld [vmem:[%s3282_s2 + $0x28] sm:$0xff] }
 0x170   :  { %1244 = vmatpush.msrb.mxu3 %v1165_v32 }
 0x171   :  { %984 = vmatpush.msra.mxu1 %v948_v12  ;;  %1030 = vmatpush.msra.mxu2 %v948_v12  ;;  %v1163_v12 = vld [vmem:[%s3282_s2 + $0x18] sm:$0xff] }
 0x172   :  { %1245 = vmatpush.msrb.mxu3 %v1164_v17  ;;  %v2235_v17 = vld [vmem:[%s3285_s5] ss:$0 sm:$0xff] }
 0x173   :  { %985 = vmatpush.msra.mxu1 %v947_v24  ;;  %1031 = vmatpush.msra.mxu2 %v947_v24  ;;  %v2181_v24 = vld [vmem:[%s3282_s2 + $0xb0] sm:$0xff] }
 0x174   :  { %1246 = vmatpush.msrb.mxu3 %v1163_v12  ;;  %1297 = vmatpush.msrb.mxu0 %v2181_v24 }
 0x175   :  { %986 = vmatpush.msra.mxu1 %v946_v7  ;;  %1032 = vmatpush.msra.mxu2 %v946_v7  ;;  %v1162_v7 = vld [vmem:[%s3282_s2 + $0x10] sm:$0xff] }
 0x176   :  { %2139 = vmatmul.msk.f32.vlgmr.msra.gmra.mxu2 %vm958_vm2, %v1001_v20  ;;  %2135 = vmatmul.msk.f32.vlgmr.msra.gmra.mxu1 %vm958_vm2, %v954_v0  ;;  %v2160_v20 = vld [vmem:[%s3282_s2 + $0x48] sm:$0xff] }
 0x177   :  { %1112 = vmatpush.msrb.mxu1 %v2158_v2  ;;  %1201 = vmatpush.msrb.mxu2 %v2166_v61  ;;  %v1161_v0 = vld [vmem:[%s3282_s2 + $0x8] sm:$0xff]  ;;  %v2159_v2 = vld [vmem:[%s3282_s2 + $0x40] sm:$0xff] }
 0x178   :  { %1247 = vmatpush.msrb.mxu3 %v1162_v7  ;;  %1298 = vmatpush.msrb.mxu0 %v2180_v30 }
 0x179   :  { %1113 = vmatpush.msrb.mxu1 %v2157_v15  ;;  %1202 = vmatpush.msrb.mxu2 %v2165_v28  ;;  %v2178_v15 = vld [vmem:[%s3282_s2 + $0x98] sm:$0xff] }
 0x17a   :  { %1248 = vmatpush.msrb.mxu3 %v1161_v0  ;;  %1299 = vmatpush.msrb.mxu0 %v2179_v4  ;;  %v2189_v4 = vld [vmem:[%s3289_s9 + $0x10] sm:$0xff] }
 0x17b   :  { %1114 = vmatpush.msrb.mxu1 %v2156_v10  ;;  %1203 = vmatpush.msrb.mxu2 %v2164_v33  ;;  %v2176_v10 = vld [vmem:[%s3282_s2 + $0x88] sm:$0xff]  ;;  %s2346_s2 = smov [#allocation11]  }
 0x17c   :  { %1249 = vmatpush.msrb.mxu3 %v1160_v9  ;;  %1300 = vmatpush.msrb.mxu0 %v2178_v15  ;;  %v1333_v15 = vld [vmem:[%s3289_s9] sm:$0xff]  ;;  %s2018_s4 = sshll.u32 %s2346_s2, 4  ;;  %s2019_s4 = int_to_ptr.vmem [resolvable:$true] %s2018_s4 }
 0x17d   :  { %1115 = vmatpush.msrb.mxu1 %v2155_v38  ;;  %1204 = vmatpush.msrb.mxu2 %v2163_v34 }
 0x17e   :  { %2140 = vmatmul.msk.f32.gmra.mxu2 %vm958_vm2, %v1002_v21  ;;  %2136 = vmatmul.msk.f32.gmra.mxu1 %vm958_vm2, %v955_v40 }
 0x17f   :  { %1116 = vmatpush.msrb.mxu1 %v2154_v53  ;;  %1205 = vmatpush.msrb.mxu2 %v2162_v19 }
 0x180   :  { %1301 = vmatpush.msrb.mxu0 %v2177_v26  ;;  %v2202_v26 = vld [vmem:[%s3290_s10 + $0x78] sm:$0xff] }
 0x181   :  { %1117 = vmatpush.msrb.mxu1 %v2153_v16  ;;  %1206 = vmatpush.msrb.mxu2 %v2161_v29 }
 0x182   :  { %1302 = vmatpush.msrb.mxu0 %v2176_v10  ;;  %v2201_v10 = vld [vmem:[%s3290_s10 + $0x70] sm:$0xff] }
 0x183   :  { %1118 = vmatpush.msrb.mxu1 %v2152_v58  ;;  %1207 = vmatpush.msrb.mxu2 %v2160_v20 }
 0x184   :  { %1303 = vmatpush.msrb.mxu0 %v2175_v35  ;;  %v2200_v35 = vld [vmem:[%s3290_s10 + $0x68] sm:$0xff] }
 0x185   :  { %1119 = vmatpush.msrb.mxu1 %v2151_v6  ;;  %1208 = vmatpush.msrb.mxu2 %v2159_v2 }
 0x186   :  { %2141 = vmatmul.msk.f32.gmra.mxu2 %vm958_vm2, %v1003_v52  ;;  %2137 = vmatmul.msk.f32.gmra.mxu1 %vm958_vm2, %v956_v18 }
 0x187   :  { %1120 = vmatpush.msrb.mxu1 %v2150_v44 }
 0x189   :  { %1121 = vmatpush.msrb.mxu1 %v2149_v11 }
 0x18b   :  { %1122 = vmatpush.msrb.mxu1 %v2148_v50 }
 0x18d   :  { %1123 = vmatpush.msrb.mxu1 %v2147_v23 }
 0x18e   :  { %2142 = vmatmul.msk.f32.gmra.mxu2 %vm958_vm2, %v1004_v13  ;;  %2138 = vmatmul.msk.f32.gmra.mxu1 %vm958_vm2, %v957_v43 }
 0x18f   :  { %1124 = vmatpush.msrb.mxu1 %v2146_v5 }
 0x191   :  { %1125 = vmatpush.msrb.mxu1 %v2145_v37 }
 0x193   :  { %1126 = vmatpush.msrb.mxu1 %v2144_v39 }
 0x195   :  { %1127 = vmatpush.msrb.mxu1 %v2143_v47 }
 0x1f3   :  { %v988_v56 = vpop.f32.mrf.mxu1 }
 0x1f9   :  { %v1034_v51 = vpop.f32.mrf.mxu2 }
 0x1fa   :  { %v1046_v62 = vmax.f32 %v988_v56, %v1034_v51  ;;  %v1404_v51 = vld [vmem:[%s3290_s10 + $0x30] sm:$0xff] }
 0x1fb   :  { %v991_v27 = vpop.f32.mrf.mxu1 }
 0x1fc   :  { %1082 = vmatmul.f32.vlgmr.msra.gmra.mxu3 %v1046_v62  ;;  %1128 = vmatmul.f32.vlgmr.msrb.gmra.mxu1 %v1046_v62 }
 0x1fd   :  { %1420 = vmatpush.msra.mxu3 %v1405_v49 }
 0x1ff   :  { %1421 = vmatpush.msra.mxu3 %v1404_v51 }
 0x201   :  { %v1037_v63 = vpop.f32.mrf.mxu2 }
 0x202   :  { %v1047_v31 = vmax.f32 %v991_v27, %v1037_v63  ;;  %v1403_v27 = vld [vmem:[%s3290_s10 + $0x28] sm:$0xff]  ;;  %v1402_v63 = vld [vmem:[%s3290_s10 + $0x20] sm:$0xff] }
 0x203   :  { %v994_v57 = vpop.f32.mrf.mxu1  ;;  %1422 = vmatpush.msra.mxu3 %v1403_v27 }
 0x204   :  { %1085 = vmatmul.f32.gmra.mxu3 %v1047_v31  ;;  %1131 = vmatmul.f32.gmra.mxu1 %v1047_v31 }
 0x205   :  { %1423 = vmatpush.msra.mxu3 %v1402_v63 }
 0x209   :  { %v1040_v8 = vpop.f32.mrf.mxu2 }
 0x20a   :  { %v1048_v22 = vmax.f32 %v994_v57, %v1040_v8  ;;  %v1401_v57 = vld [vmem:[%s3290_s10 + $0x18] sm:$0xff] }
 0x20b   :  { %v997_v41 = vpop.f32.mrf.mxu1  ;;  %1424 = vmatpush.msra.mxu3 %v1401_v57 }
 0x20c   :  { %1088 = vmatmul.f32.gmra.mxu3 %v1048_v22  ;;  %1134 = vmatmul.f32.gmra.mxu1 %v1048_v22 }
 0x211   :  { %v1043_v25 = vpop.f32.mrf.mxu2 }
 0x212   :  { %v1049_v1 = vmax.f32 %v997_v41, %v1043_v25 }
 0x214   :  { %1091 = vmatmul.f32.gmra.mxu3 %v1049_v1  ;;  %1137 = vmatmul.f32.gmra.mxu1 %v1049_v1  ;;  %v1400_v1 = vld [vmem:[%s3290_s10 + $0x10] sm:$0xff] }
 0x215   :  { %1425 = vmatpush.msra.mxu3 %v1400_v1 }
 0x279   :  { %v1129_v38 = vpop.f32.mrf.mxu1 }
 0x27f   :  { %v1083_v21 = vpop.f32.mrf.mxu3 }
 0x280   :  { %v1141_v40 = vmax.f32 %v1083_v21, %v1129_v38  ;;  %v2190_v38 = vld [vmem:[%s3289_s9 + $0x18] sm:$0xff]  ;;  %v1334_v21 = vld [vmem:[%s3289_s9 + $0x8] sm:$0xff] }
 0x281   :  { %v1132_v42 = vpop.f32.mrf.mxu1 }
 0x282   :  { %1152 = vst.msk [vmem:[#allocation3 + $0x1] sm:$0xff] %vm958_vm2, %v1141_v40  ;;  %v2199_v40 = vld [vmem:[%s3290_s10 + $0x60] sm:$0xff] }
 0x287   :  { %v1086_v53 = vpop.f32.mrf.mxu3 }
 0x288   :  { %v1142_v54 = vmax.f32 %v1086_v53, %v1132_v42  ;;  %v1399_v42 = vld [vmem:[%s3290_s10 + $0x8] sm:$0xff]  ;;  %v1398_v53 = vld [vmem:[%s3290_s10] sm:$0xff] }
 0x289   :  { %v1168_v16 = vld [vmem:[#allocation3 + $0x1] sm:$0xff]  ;;  %v1135_v58 = vpop.f32.mrf.mxu1  ;;  %1426 = vmatpush.msra.mxu3 %v1399_v42 }
 0x28a   :  { %v1156_v55 = vld [vmem:[#allocation3] sm:$0xff]  ;;  %1153 = vst.msk [vmem:[#allocation3 + $0x9] sm:$0xff] %vm958_vm2, %v1142_v54  ;;  %2167 = vmatmul.msk.f32.vlgmr.msrb.gmra.mxu2 %vm958_vm2, %v1168_v16  ;;  %v2198_v54 = vld [vmem:[%s3290_s10 + $0x58] sm:$0xff] }
 0x28b   :  { %2171 = vmatmul.msk.f32.vlgmr.msrb.gmra.mxu3 %vm958_vm2, %v1156_v55  ;;  %v2197_v16 = vld [vmem:[%s3290_s10 + $0x50] sm:$0xff]  ;;  %v2196_v55 = vld [vmem:[%s3290_s10 + $0x48] sm:$0xff]  ;;  %v1722_v42 = vld [vmem:[%s3292_s12 + $0x58] sm:$0xff] }
 0x28c   :  { %1427 = vmatpush.msra.mxu3 %v1398_v53  ;;  %v1619_v53 = vld [vmem:[%s3292_s12 + $0x10] sm:$0xff] }
 0x28f   :  { %v1089_v59 = vpop.f32.mrf.mxu3 }
 0x290   :  { %v1143_v6 = vmax.f32 %v1089_v59, %v1135_v58  ;;  %v2195_v58 = vld [vmem:[%s3290_s10 + $0x40] sm:$0xff] }
 0x291   :  { %v1169_v52 = vld [vmem:[#allocation3 + $0x9] sm:$0xff]  ;;  %v1138_v45 = vpop.f32.mrf.mxu1 }
 0x292   :  { %v1157_v18 = vld [vmem:[#allocation3 + $0x8] sm:$0xff]  ;;  %1154 = vst.msk [vmem:[#allocation3 + $0x19] sm:$0xff] %vm958_vm2, %v1143_v6  ;;  %2168 = vmatmul.msk.f32.gmra.mxu2 %vm958_vm2, %v1169_v52 }
 0x293   :  { %v1263_v36 = vld [vmem:[#allocation3 + $0x2] sm:$0xff]  ;;  %2172 = vmatmul.msk.f32.gmra.mxu3 %vm958_vm2, %v1157_v18  ;;  %v1264_v13 = vld [vmem:[#allocation3 + $0xa] sm:$0xff] }
 0x294   :  { %2183 = vmatmul.msk.f32.vlgmr.msrb.gmra.mxu0 %vm958_vm2, %v1263_v36 }
 0x297   :  { %v1092_v44 = vpop.f32.mrf.mxu3 }
 0x298   :  { %v1144_v11 = vmax.f32 %v1092_v44, %v1138_v45  ;;  %v1487_v45 = vld [vmem:[#allocation5 + $0x38] sm:$0xff] }
 0x299   :  { %v1170_v46 = vld [vmem:[#allocation3 + $0x19] sm:$0xff] }
 0x29a   :  { %v1158_v50 = vld [vmem:[#allocation3 + $0x18] sm:$0xff]  ;;  %1155 = vst.msk [vmem:[#allocation3 + $0x21] sm:$0xff] %vm958_vm2, %v1144_v11  ;;  %2169 = vmatmul.msk.f32.gmra.mxu2 %vm958_vm2, %v1170_v46  ;;  %v1480_v11 = vld [vmem:[#allocation5 + $0x18] sm:$0xff]  ;;  %v1486_v46 = vld [vmem:[#allocation5 + $0x30] sm:$0xff] }
 0x29b   :  { %2173 = vmatmul.msk.f32.gmra.mxu3 %vm958_vm2, %v1158_v50  ;;  %v1479_v50 = vld [vmem:[#allocation5 + $0x10] sm:$0xff] }
 0x29c   :  { %2184 = vmatmul.msk.f32.gmra.mxu0 %vm958_vm2, %v1264_v13  ;;  %1535 = vmatpush.msrb.mxu3 %v1480_v11  ;;  %v1552_v13 = vld [vmem:[#allocation5 + $0x58] sm:$0xff] }
 0x29d   :  { %1571 = vmatpush.msra.mxu0 %v1552_v13  ;;  %v1826_v11 = vld [vmem:[%s3292_s12 + $0x98] sm:$0xff] }
 0x29e   :  { %1536 = vmatpush.msrb.mxu3 %v1479_v50 }
 0x2a1   :  { %v1171_v43 = vld [vmem:[#allocation3 + $0x21] sm:$0xff] }
 0x2a2   :  { %v1159_v3 = vld [vmem:[#allocation3 + $0x20] sm:$0xff]  ;;  %2170 = vmatmul.msk.f32.gmra.mxu2 %vm958_vm2, %v1171_v43  ;;  %v1485_v43 = vld [vmem:[#allocation5 + $0x28] sm:$0xff] }
 0x2a3   :  { %v1265_v23 = vld [vmem:[#allocation3 + $0x1a] sm:$0xff]  ;;  %2174 = vmatmul.msk.f32.gmra.mxu3 %vm958_vm2, %v1159_v3  ;;  %v1266_v60 = vld [vmem:[#allocation3 + $0x22] sm:$0xff] }
 0x2a4   :  { %2185 = vmatmul.msk.f32.gmra.mxu0 %vm958_vm2, %v1265_v23  ;;  %v1478_v3 = vld [vmem:[#allocation5 + $0x8] sm:$0xff]  ;;  %v1484_v23 = vld [vmem:[#allocation5 + $0x20] sm:$0xff] }
 0x2a5   :  { %1537 = vmatpush.msrb.mxu3 %v1478_v3  ;;  %v1876_v3 = vld [vmem:[%s3292_s12 + $0xa8] sm:$0xff] }
 0x2ac   :  { %2186 = vmatmul.msk.f32.gmra.mxu0 %vm958_vm2, %v1266_v60  ;;  %v1477_v60 = vld [vmem:[#allocation5] sm:$0xff] }
 0x2ad   :  { %1538 = vmatpush.msrb.mxu3 %v1477_v60  ;;  %v1875_v60 = vld [vmem:[%s3292_s12 + $0xa0] sm:$0xff] }
 0x30d   :  { %v1210_v5 = vpop.f32.mrf.mxu2 }
 0x30e   :  { %v1251_v37 = vpop.f32.mrf.mxu3 }
 0x30f   :  { %v1252_v33 = vadd.f32 %v1251_v37, %v1210_v5  ;;  %v1551_v5 = vld [vmem:[#allocation5 + $0x50] sm:$0xff]  ;;  %v1550_v37 = vld [vmem:[#allocation5 + $0x48] sm:$0xff] }
 0x310   :  { %1572 = vmatpush.msra.mxu0 %v1551_v5  ;;  %v1823_v5 = vld [vmem:[%s3292_s12 + $0x80] sm:$0xff] }
 0x311   :  { %v1305_v39 = vpop.f32.mrf.mxu0 }
 0x312   :  { %v1317_v14 = vadd.f32 %v1305_v39, %v1252_v33  ;;  %v1549_v39 = vld [vmem:[#allocation5 + $0x40] sm:$0xff]  ;;  %1573 = vmatpush.msra.mxu0 %v1550_v37  ;;  %v1982_v37 = vld [vmem:[%s3292_s12 + $0xf8] sm:$0xff] }
 0x314   :  { %v1325_v0 = vadd.f32 %v2235_v17, %v1317_v14  ;;  %1574 = vmatpush.msra.mxu0 %v1549_v39  ;;  %v1648_v14 = vld [vmem:[%s3292_s12 + $0x38] sm:$0xff] }
 0x315   :  { %v1213_v47 = vpop.f32.mrf.mxu2  ;;  %v1930_v39 = vld [vmem:[%s3292_s12 + $0xd8] sm:$0xff] }
 0x316   :  { %v1254_v56 = vpop.f32.mrf.mxu3  ;;  %v1329_v9 = vmax.f32 %v1325_v0, 0.0  ;;  %v1646_v0 = vld [vmem:[%s3292_s12 + $0x28] sm:$0xff] }
 0x317   :  { %v1255_v8 = vadd.f32 %v1254_v56, %v1213_v47 }
 0x319   :  { %v1308_v61 = vpop.f32.mrf.mxu0 }
 0x31a   :  { %v1318_v19 = vadd.f32 %v1308_v61, %v1255_v8 }
 0x31c   :  { %v1326_v7 = vadd.f32 %v2235_v17, %v1318_v19 }
 0x31d   :  { %v1216_v48 = vpop.f32.mrf.mxu2 }
 0x31e   :  { %v1257_v28 = vpop.f32.mrf.mxu3  ;;  %v1330_v2 = vmax.f32 %v1326_v7, 0.0  ;;  %v1647_v7 = vld [vmem:[%s3292_s12 + $0x30] sm:$0xff] }
 0x31f   :  { %v1258_v31 = vadd.f32 %v1257_v28, %v1216_v48 }
 0x321   :  { %v1311_v62 = vpop.f32.mrf.mxu0 }
 0x322   :  { %v1319_v32 = vadd.f32 %v1311_v62, %v1258_v31 }
 0x324   :  { %v1327_v24 = vadd.f32 %v2235_v17, %v1319_v32 }
 0x325   :  { %v1219_v22 = vpop.f32.mrf.mxu2 }
 0x326   :  { %v1260_v41 = vpop.f32.mrf.mxu3  ;;  %v1331_v30 = vmax.f32 %v1327_v24, 0.0 }
 0x327   :  { %v1261_v25 = vadd.f32 %v1260_v41, %v1219_v22 }
 0x329   :  { %v1314_v34 = vpop.f32.mrf.mxu0 }
 0x32a   :  { %v1320_v12 = vadd.f32 %v1314_v34, %v1261_v25  ;;  %v2236_v34 = vld [vmem:[%s3286_s6] ss:$0 sm:$0xff] }
 0x32c   :  { %v1328_v29 = vadd.f32 %v2235_v17, %v1320_v12 }
 0x32e   :  { %v1332_v20 = vmax.f32 %v1328_v29, 0.0 }
 0x330   :  { %1353 = vmatpush.msra.mxu1 %v1332_v20  ;;  %1385 = vmatpush.msra.mxu2 %v1332_v20 }
 0x332   :  { %1354 = vmatpush.msra.mxu1 %v1331_v30  ;;  %1386 = vmatpush.msra.mxu2 %v1331_v30 }
 0x334   :  { %1355 = vmatpush.msra.mxu1 %v1330_v2  ;;  %1387 = vmatpush.msra.mxu2 %v1330_v2  ;;  %v1621_v2 = vld [vmem:[#allocation10 + $0x2] sm:$0x3] }
 0x336   :  { %1356 = vmatpush.msra.mxu1 %v1329_v9  ;;  %1388 = vmatpush.msra.mxu2 %v1329_v9  ;;  %v1747_v9 = vld [vmem:[#allocation10 + $0x6] sm:$0x3] }
 0x337   :  { %2191 = vmatmul.msk.f32.vlgmr.msra.gmra.mxu2 %vm95_vm0, %v2189_v4  ;;  %2187 = vmatmul.msk.f32.vlgmr.msra.gmra.mxu1 %vm95_vm0, %v1333_v15  ;;  %v1592_v4 = vld [vmem:[#allocation10] sm:$0x3]  ;;  %v1695_v15 = vld [vmem:[#allocation10 + $0x4] sm:$0x3] }
 0x338   :  { %1452 = vmatpush.msrb.mxu1 %v2202_v26  ;;  %1506 = vmatpush.msrb.mxu2 %v1487_v45  ;;  %v1851_v26 = vld [vmem:[#allocation10 + $0xa] sm:$0x3] }
 0x33a   :  { %1453 = vmatpush.msrb.mxu1 %v2201_v10  ;;  %1507 = vmatpush.msrb.mxu2 %v1486_v46  ;;  %v1799_v10 = vld [vmem:[#allocation10 + $0x8] sm:$0x3]  ;;  %v1877_v46 = vld [vmem:[%s3292_s12 + $0xb0] sm:$0xff] }
 0x33c   :  { %1454 = vmatpush.msrb.mxu1 %v2200_v35  ;;  %1508 = vmatpush.msrb.mxu2 %v1485_v43  ;;  %v1955_v35 = vld [vmem:[#allocation10 + $0xe] sm:$0x3]  ;;  %v1825_v43 = vld [vmem:[%s3292_s12 + $0x90] sm:$0xff] }
 0x33e   :  { %1455 = vmatpush.msrb.mxu1 %v2199_v40  ;;  %1509 = vmatpush.msrb.mxu2 %v1484_v23  ;;  %v1620_v40 = vld [vmem:[%s3292_s12 + $0x18] sm:$0xff]  ;;  %v1824_v23 = vld [vmem:[%s3292_s12 + $0x88] sm:$0xff] }
 0x33f   :  { %2192 = vmatmul.msk.f32.gmra.mxu2 %vm95_vm0, %v2190_v38  ;;  %2188 = vmatmul.msk.f32.gmra.mxu1 %vm95_vm0, %v1334_v21  ;;  %v1903_v38 = vld [vmem:[#allocation10 + $0xc] sm:$0x3]  ;;  %v1645_v21 = vld [vmem:[%s3292_s12 + $0x20] sm:$0xff] }
 0x340   :  { %1456 = vmatpush.msrb.mxu1 %v2198_v54  ;;  %v1721_v54 = vld [vmem:[%s3292_s12 + $0x50] sm:$0xff] }
 0x342   :  { %1457 = vmatpush.msrb.mxu1 %v2197_v16  ;;  %v1618_v16 = vld [vmem:[%s3292_s12 + $0x8] sm:$0xff] }
 0x344   :  { %1458 = vmatpush.msrb.mxu1 %v2196_v55  ;;  %v1720_v55 = vld [vmem:[%s3292_s12 + $0x48] sm:$0xff] }
 0x346   :  { %1459 = vmatpush.msrb.mxu1 %v2195_v58  ;;  %v1617_v58 = vld [vmem:[%s3292_s12] sm:$0xff] }
 0x3b4   :  { %v1358_v59 = vpop.f32.mrf.mxu1 }
 0x3ba   :  { %v1390_v6 = vpop.f32.mrf.mxu2 }
 0x3bb   :  { %v1396_v52 = vmax.f32 %v1358_v59, %v1390_v6  ;;  %v1719_v59 = vld [vmem:[%s3292_s12 + $0x40] sm:$0xff]  ;;  %v1774_v6 = vld [vmem:[%s3292_s12 + $0x78] sm:$0xff] }
 0x3bc   :  { %v1361_v18 = vpop.f32.mrf.mxu1 }
 0x3bd   :  { %2193 = vmatmul.msk.f32.vlgmr.msra.gmra.mxu3 %vm958_vm2, %v1396_v52  ;;  %2203 = vmatmul.msk.f32.vlgmr.msrb.gmra.mxu1 %vm958_vm2, %v1396_v52  ;;  %v1773_v52 = vld [vmem:[%s3292_s12 + $0x70] sm:$0xff] }
 0x3be   :  { %1664 = vmatpush.msra.mxu3 %v1648_v14 }
 0x3c0   :  { %1665 = vmatpush.msra.mxu3 %v1647_v7 }
 0x3c2   :  { %v1393_v36 = vpop.f32.mrf.mxu2  ;;  %1666 = vmatpush.msra.mxu3 %v1646_v0 }
 0x3c3   :  { %v1397_v44 = vmax.f32 %v1361_v18, %v1393_v36  ;;  %v1772_v18 = vld [vmem:[%s3292_s12 + $0x68] sm:$0xff]  ;;  %v1771_v36 = vld [vmem:[%s3292_s12 + $0x60] sm:$0xff] }
 0x3c4   :  { %1667 = vmatpush.msra.mxu3 %v1645_v21 }
 0x3c5   :  { %2194 = vmatmul.msk.f32.gmra.mxu3 %vm958_vm2, %v1397_v44  ;;  %2204 = vmatmul.msk.f32.gmra.mxu1 %vm958_vm2, %v1397_v44  ;;  %v1878_v44 = vld [vmem:[%s3292_s12 + $0xb8] sm:$0xff] }
 0x43a   :  { %v1461_v47 = vpop.f32.mrf.mxu1 }
 0x440   :  { %v1429_v56 = vpop.f32.mrf.mxu3 }
 0x441   :  { %v1467_v61 = vmax.f32 %v1429_v56, %v1461_v47  ;;  %v1981_v47 = vld [vmem:[%s3292_s12 + $0xf0] sm:$0xff] }
 0x442   :  { %v1464_v28 = vpop.f32.mrf.mxu1 }
 0x443   :  { %1473 = vst.msk [vmem:[#allocation4 + $0x1] sm:$0xff] %vm95_vm0, %v1467_v61  ;;  %v1929_v61 = vld [vmem:[%s3292_s12 + $0xd0] sm:$0xff] }
 0x448   :  { %v1432_v48 = vpop.f32.mrf.mxu3 }
 0x449   :  { %v1468_v49 = vmax.f32 %v1432_v48, %v1464_v28  ;;  %v1980_v48 = vld [vmem:[%s3292_s12 + $0xe8] sm:$0xff] }
 0x44a   :  { %v1481_v51 = vld [vmem:[#allocation4 + $0x1] sm:$0xff] }
 0x44b   :  { %v1475_v62 = vld [vmem:[#allocation4] sm:$0xff]  ;;  %1474 = vst.msk [vmem:[#allocation4 + $0x11] sm:$0xff] %vm95_vm0, %v1468_v49  ;;  %2205 = vmatmul.msk.f32.vlgmr.msrb.gmra.mxu2 %vm95_vm0, %v1481_v51  ;;  %v1928_v49 = vld [vmem:[%s3292_s12 + $0xc8] sm:$0xff] }
 0x44c   :  { %v1546_v27 = vld [vmem:[#allocation4 + $0x2] sm:$0xff]  ;;  %2207 = vmatmul.msk.f32.vlgmr.msrb.gmra.mxu3 %vm95_vm0, %v1475_v62 }
 0x44d   :  { %2209 = vmatmul.msk.f32.vlgmr.msra.gmra.mxu0 %vm95_vm0, %v1546_v27  ;;  %1738 = vmatpush.msrb.mxu3 %v1722_v42  ;;  %v1979_v51 = vld [vmem:[%s3292_s12 + $0xe0] sm:$0xff] }
 0x44e   :  { %v1927_v62 = vld [vmem:[%s3292_s12 + $0xc0] sm:$0xff] }
 0x44f   :  { %1739 = vmatpush.msrb.mxu3 %v1721_v54 }
 0x451   :  { %1740 = vmatpush.msrb.mxu3 %v1720_v55 }
 0x452   :  { %v1482_v63 = vld [vmem:[#allocation4 + $0x11] sm:$0xff] }
 0x453   :  { %v1476_v31 = vld [vmem:[#allocation4 + $0x10] sm:$0xff]  ;;  %2206 = vmatmul.msk.f32.gmra.mxu2 %vm95_vm0, %v1482_v63  ;;  %1741 = vmatpush.msrb.mxu3 %v1719_v59 }
 0x454   :  { %v1547_v57 = vld [vmem:[#allocation4 + $0x12] sm:$0xff]  ;;  %2208 = vmatmul.msk.f32.gmra.mxu3 %vm95_vm0, %v1476_v31 }
 0x455   :  { %2210 = vmatmul.msk.f32.gmra.mxu0 %vm95_vm0, %v1547_v57 }
 0x4ca   :  { %v1576_v8 = vpop.f32.mrf.mxu0 }
 0x4ce   :  { %v1511_v22 = vpop.f32.mrf.mxu2 }
 0x4cf   :  { %v1540_v41 = vpop.f32.mrf.mxu3 }
 0x4d0   :  { %v1541_v25 = vadd.f32 %v1540_v41, %v1511_v22 }
 0x4d2   :  { %v1582_v32 = vadd.f32 %v1576_v8, %v1541_v25  ;;  %v1579_v19 = vpop.f32.mrf.mxu0 }
 0x4d4   :  { %v1588_v24 = vadd.f32 %v2236_v34, %v1582_v32 }
 0x4d6   :  { %v1514_v1 = vpop.f32.mrf.mxu2  ;;  %v1590_v30 = vmax.f32 %v1588_v24, 0.0 }
 0x4d7   :  { %v1543_v33 = vpop.f32.mrf.mxu3 }
 0x4d8   :  { %v1544_v17 = vadd.f32 %v1543_v33, %v1514_v1 }
 0x4da   :  { %v1583_v12 = vadd.f32 %v1579_v19, %v1544_v17 }
 0x4dc   :  { %v1589_v29 = vadd.f32 %v2236_v34, %v1583_v12 }
 0x4de   :  { %v1591_v20 = vmax.f32 %v1589_v29, 0.0  ;;  %v2237_v29 = vld [vmem:[%s3293_s13] ss:$0 sm:$0xff] }
 0x4e0   :  { %1639 = vmatpush.msra.mxu2 %v1591_v20  ;;  %1765 = vmatpush.msrb.mxu0 %v1591_v20 }
 0x4e1   :  { %1611 = vmatpush.msra.mxu1 %v1591_v20 }
 0x4e2   :  { %1640 = vmatpush.msra.mxu2 %v1590_v30  ;;  %1766 = vmatpush.msrb.mxu0 %v1590_v30 }
 0x4e3   :  { %2212 = vmatmul.msk.f32.vlgmr.msra.gmra.mxu2 %vm1593_vm4, %v1621_v2  ;;  %2217 = vmatmul.msk.f32.vlgmr.msrb.gmra.mxu0 %vm1593_vm4, %v1747_v9 }
 0x4e4   :  { %1869 = vmatpush.msra.mxu0 %v1591_v20  ;;  %1713 = vmatpush.msrb.mxu2 %v1591_v20 }
 0x4e5   :  { %1612 = vmatpush.msra.mxu1 %v1590_v30 }
 0x4e6   :  { %1870 = vmatpush.msra.mxu0 %v1590_v30  ;;  %1714 = vmatpush.msrb.mxu2 %v1590_v30 }
 0x4e7   :  { %2211 = vmatmul.msk.f32.vlgmr.msra.gmra.mxu1 %vm1593_vm4, %v1592_v4 }
 0x4e8   :  { %1973 = vmatpush.msrb.mxu0 %v1591_v20  ;;  %1817 = vmatpush.msra.mxu2 %v1591_v20 }
 0x4e9   :  { %1687 = vmatpush.msrb.mxu1 %v1620_v40 }
 0x4ea   :  { %1974 = vmatpush.msrb.mxu0 %v1590_v30  ;;  %1818 = vmatpush.msra.mxu2 %v1590_v30 }
 0x4eb   :  { %2215 = vmatmul.msk.f32.vlgmr.msrb.gmra.mxu2 %vm1593_vm4, %v1695_v15  ;;  %2221 = vmatmul.msk.f32.vlgmr.msra.gmra.mxu0 %vm1593_vm4, %v1851_v26 }
 0x4ec   :  { %1921 = vmatpush.msrb.mxu2 %v1591_v20  ;;  %1688 = vmatpush.msrb.mxu1 %v1619_v53 }
 0x4ee   :  { %1922 = vmatpush.msrb.mxu2 %v1590_v30  ;;  %1689 = vmatpush.msrb.mxu1 %v1618_v16 }
 0x4f0   :  { %1690 = vmatpush.msrb.mxu1 %v1617_v58 }
 0x4f2   :  { %1790 = vmatpush.msra.mxu1 %v1774_v6 }
 0x4f3   :  { %2219 = vmatmul.msk.f32.vlgmr.msra.gmra.mxu2 %vm1593_vm4, %v1799_v10  ;;  %2225 = vmatmul.msk.f32.vlgmr.msrb.gmra.mxu0 %vm1593_vm4, %v1955_v35 }
 0x4f4   :  { %1791 = vmatpush.msra.mxu1 %v1773_v52 }
 0x4f6   :  { %1792 = vmatpush.msra.mxu1 %v1772_v18 }
 0x4f8   :  { %1793 = vmatpush.msra.mxu1 %v1771_v36 }
 0x4fb   :  { %2223 = vmatmul.msk.f32.vlgmr.msrb.gmra.mxu2 %vm1593_vm4, %v1903_v38 }
 0x560   :  { %v1768_v13 = vpop.f32.mrf.mxu0 }
 0x564   :  { %v1614_v45 = vpop.f32.mrf.mxu1 }
 0x565   :  { %2214 = vmatmul.msk.f32.vlgmr.msrb.gmra.mxu1 %vm95_vm0, %v1614_v45 }
 0x566   :  { %v1642_v50 = vpop.f32.mrf.mxu2  ;;  %1894 = vmatpush.msrb.mxu1 %v1878_v44 }
 0x567   :  { %2213 = vmatmul.msk.f32.vlgmr.msra.gmra.mxu3 %vm95_vm0, %v1642_v50 }
 0x568   :  { %1842 = vmatpush.msra.mxu3 %v1826_v11  ;;  %1895 = vmatpush.msrb.mxu1 %v1877_v46  ;;  %v1872_v28 = vpop.f32.mrf.mxu0 }
 0x56a   :  { %1843 = vmatpush.msra.mxu3 %v1825_v43  ;;  %1896 = vmatpush.msrb.mxu1 %v1876_v3 }
 0x56c   :  { %1844 = vmatpush.msra.mxu3 %v1824_v23  ;;  %1897 = vmatpush.msrb.mxu1 %v1875_v60 }
 0x56d   :  { %2218 = vmatmul.msk.f32.vlgmr.msra.gmra.mxu1 %vm95_vm0, %v1768_v13 }
 0x56e   :  { %v1716_v56 = vpop.f32.mrf.mxu2  ;;  %1845 = vmatpush.msra.mxu3 %v1823_v5  ;;  %1998 = vmatpush.msra.mxu1 %v1982_v37 }
 0x56f   :  { %2216 = vmatmul.msk.f32.vlgmr.msrb.gmra.mxu3 %vm95_vm0, %v1716_v56 }
 0x570   :  { %1946 = vmatpush.msrb.mxu3 %v1930_v39  ;;  %1999 = vmatpush.msra.mxu1 %v1981_v47  ;;  %v1976_v63 = vpop.f32.mrf.mxu0 }
 0x572   :  { %1947 = vmatpush.msrb.mxu3 %v1929_v61  ;;  %2000 = vmatpush.msra.mxu1 %v1980_v48 }
 0x574   :  { %1948 = vmatpush.msrb.mxu3 %v1928_v49  ;;  %2001 = vmatpush.msra.mxu1 %v1979_v51 }
 0x575   :  { %2222 = vmatmul.msk.f32.vlgmr.msrb.gmra.mxu1 %vm95_vm0, %v1872_v28 }
 0x576   :  { %v1820_v27 = vpop.f32.mrf.mxu2  ;;  %1949 = vmatpush.msrb.mxu3 %v1927_v62 }
 0x577   :  { %2220 = vmatmul.msk.f32.vlgmr.msra.gmra.mxu3 %vm95_vm0, %v1820_v27 }
 0x57d   :  { %2226 = vmatmul.msk.f32.vlgmr.msra.gmra.mxu1 %vm95_vm0, %v1976_v63 }
 0x57e   :  { %v1924_v31 = vpop.f32.mrf.mxu2 }
 0x57f   :  { %2224 = vmatmul.msk.f32.vlgmr.msrb.gmra.mxu3 %vm95_vm0, %v1924_v31 }
 0x5e2   :  { %v1692_v57 = vpop.f32.mrf.mxu1 }
 0x5ea   :  { %v1669_v8 = vpop.f32.mrf.mxu3  ;;  %v1795_v22 = vpop.f32.mrf.mxu1 }
 0x5eb   :  { %v1693_v25 = vadd.f32 %v1692_v57, %v1669_v8 }
 0x5f2   :  { %v1743_v41 = vpop.f32.mrf.mxu3  ;;  %v1899_v33 = vpop.f32.mrf.mxu1 }
 0x5f3   :  { %v1746_v1 = vadd.f32 %v1743_v41, %v1693_v25 }
 0x5f5   :  { %v1798_v34 = vadd.f32 %v1795_v22, %v1746_v1 }
 0x5fa   :  { %v1847_v32 = vpop.f32.mrf.mxu3  ;;  %v2003_v14 = vpop.f32.mrf.mxu1 }
 0x5fb   :  { %v1850_v17 = vadd.f32 %v1847_v32, %v1798_v34 }
 0x5fd   :  { %v1902_v19 = vadd.f32 %v1899_v33, %v1850_v17 }
 0x602   :  { %v1951_v12 = vpop.f32.mrf.mxu3 }
 0x603   :  { %v1954_v24 = vadd.f32 %v1951_v12, %v1902_v19 }
 0x605   :  { %v2006_v7 = vadd.f32 %v2003_v14, %v1954_v24 }
 0x607   :  { %v2011_v20 = vadd.f32 %v2237_v29, %v2006_v7 }
 0x609   :  { %2012 = vst.msk [vmem:[#allocation11] sm:$0x3] %vm100_vm1, %v2011_v20 }
 0x60a   :  { %2023 = dma.vmem_to_hbm [thread:$0]  %s2019_s4, 32, %s2021_s19, [#allocation7]  }
 0x60b   :  { %2338 = dma.done.wait [#allocation7], 32  }
 0x60c   :  { %2339 = vsyncadd [#allocation7], 4294967264 }
 0x60d   :  { %2028 = vsyncpa [#allocation6], 1 }
 0x60e   :  { %2029 = vsyncpa [#allocation9], 1 }
 0x60f   :  { %2030 = vsyncpa [#allocation7], 1 }

</bundles_post_ra>
